<compile_context>
chip_gen: v6e
topology: v6e:2x2x1
jax: 0.10.0
libtpu: 0.0.40
codegen_flags: <defaults>
</compile_context>

<pallas_src>
import numpy as np
import jax
import jax.numpy as jnp
from jax.experimental import pallas as pl
from jax.experimental.pallas import tpu as pltpu

LEAKY_SLOPE = 0.2
BN_EPS = 0.8          # nn.BatchNorm1d(out_features, 0.8) -> eps = 0.8
HIDDEN = 1024         # width feeding the final Linear


# ----------------------------------------------------------------------------
# Math helpers (shared by kernels and the pure-JAX reference)
# ----------------------------------------------------------------------------
def _leaky_relu(x):
    return jnp.where(x >= 0, x, LEAKY_SLOPE * x)


def _batchnorm_train(x, gamma, beta):
    # Training-mode BatchNorm1d: biased batch statistics over the batch axis.
    # Two-pass centered variance (matches PyTorch's batch-var computation and
    # avoids E[x^2]-mean^2 cancellation).
    mean = jnp.mean(x, axis=0, keepdims=True)
    var = jnp.mean(jnp.square(x - mean), axis=0, keepdims=True)
    return (x - mean) * jax.lax.rsqrt(var + BN_EPS) * gamma + beta


# ----------------------------------------------------------------------------
# Kernels
# ----------------------------------------------------------------------------
def trunk_kernel(z_ref,
                 w1_ref, b1_ref,
                 w2_ref, b2_ref, g2_ref, be2_ref,
                 w3_ref, b3_ref, g3_ref, be3_ref,
                 w4_ref, b4_ref, g4_ref, be4_ref,
                 h_ref):
    """Layers 1-4 on the whole batch (exact training-mode BN statistics)."""
    h = jnp.dot(z_ref[...], w1_ref[...],
                preferred_element_type=jnp.float32) + b1_ref[...]
    h = _leaky_relu(h)

    h = jnp.dot(h.astype(jnp.bfloat16), w2_ref[...],
                preferred_element_type=jnp.float32) + b2_ref[...]
    h = _leaky_relu(_batchnorm_train(h, g2_ref[...], be2_ref[...]))

    h = jnp.dot(h.astype(jnp.bfloat16), w3_ref[...],
                preferred_element_type=jnp.float32) + b3_ref[...]
    h = _leaky_relu(_batchnorm_train(h, g3_ref[...], be3_ref[...]))

    h = jnp.dot(h.astype(jnp.bfloat16), w4_ref[...],
                preferred_element_type=jnp.float32) + b4_ref[...]
    h = _leaky_relu(_batchnorm_train(h, g4_ref[...], be4_ref[...]))

    h_ref[...] = h.astype(jnp.bfloat16)


def head_kernel(h_ref, w5_ref, b5_ref, out_ref):
    """Final Linear(1024, out_dim) + Tanh on one lane-dense output tile.
    Padded w5/b5 columns (when out_dim % tn != 0) may hold garbage; that is
    safe because the corresponding output stores are masked by Pallas."""
    o = jnp.dot(h_ref[...], w5_ref[...],
                preferred_element_type=jnp.float32) + b5_ref[...]
    out_ref[...] = jnp.tanh(o)


# ----------------------------------------------------------------------------
# Spec / tiling helpers
# ----------------------------------------------------------------------------
def _spec(block_shape, index_map, buffer_count=None):
    """BlockSpec with optional explicit pipeline depth; falls back gracefully
    if the installed JAX lacks pipeline_mode / pl.Buffered."""
    if buffer_count is not None and hasattr(pl, "Buffered"):
        try:
            return pl.BlockSpec(block_shape, index_map,
                                pipeline_mode=pl.Buffered(buffer_count))
        except TypeError:
            pass
    return pl.BlockSpec(block_shape, index_map)


def _vmem_capacity_bytes():
    try:
        return int(pltpu.get_tpu_info().vmem_capacity_bytes)
    except Exception:
        return 64 << 20  # conservative: v7x per-TensorCore VMEM


def _round_up(x, m):
    return ((x + m - 1) // m) * m


def _max_n_tile(vmem_cap):
    # v5e/v6e: 128 MiB VMEM -> 4096-lane w5 tiles; v7x: 64 MiB -> 2048.
    return 4096 if vmem_cap >= (100 << 20) else 2048


def _pick_n_tile(out_dim, max_tile):
    """Balanced, 128-aligned output-feature tile for the final layer."""
    if out_dim <= max_tile:
        return out_dim                      # single full-width tile
    n_tiles = -(-out_dim // max_tile)       # cdiv
    return _round_up(-(-out_dim // n_tiles), 128)


# ----------------------------------------------------------------------------
# Parameters (PyTorch-style init)
# ----------------------------------------------------------------------------
def init_params(key, latent_dim, img_shape):
    """Linear W,b ~ U(-1/sqrt(fan_in), +), BN gamma=1, beta=0.
    Weights stored as (in, out) bf16 (forward is x @ W + b); biases/BN f32."""
    out_dim = int(np.prod(img_shape))
    dims = [latent_dim, 128, 256, 512, HIDDEN, out_dim]
    params = []
    for i in range(5):
        fan_in, fan_out = dims[i], dims[i + 1]
        key, kw, kb = jax.random.split(key, 3)
        bound = 1.0 / np.sqrt(fan_in)
        w = jax.random.uniform(kw, (fan_in, fan_out), jnp.float32, -bound, bound)
        b = jax.random.uniform(kb, (1, fan_out), jnp.float32, -bound, bound)
        params.append(w.astype(jnp.bfloat16))   # bf16 weights: half the DMA, native MXU
        params.append(b)
        if i in (1, 2, 3):  # blocks 2..4 carry BatchNorm
            params.append(jnp.ones((1, fan_out), jnp.float32))   # gamma
            params.append(jnp.zeros((1, fan_out), jnp.float32))  # beta
    return params


# ----------------------------------------------------------------------------
# Forward pass
# ----------------------------------------------------------------------------
def generator_forward(z, params, img_shape):
    batch, latent_dim = z.shape
    out_dim = int(np.prod(img_shape))
    (w1, b1,
     w2, b2, g2, be2,
     w3, b3, g3, be3,
     w4, b4, g4, be4,
     w5, b5) = params

    z_bf16 = z.astype(jnp.bfloat16)

    # ---- trunk: layers 1-4, whole batch, everything VMEM-resident (~1.4 MiB)
    trunk_inputs = (z_bf16,
                    w1, b1,
                    w2, b2, g2, be2,
                    w3, b3, g3, be3,
                    w4, b4, g4, be4)
    tdims = [latent_dim, 128, 256, 512, HIDDEN]
    trunk_cost = pl.CostEstimate(
        flops=2 * batch * sum(tdims[i] * tdims[i + 1] for i in range(4)),
        transcendentals=256 + 512 + 1024,   # BN rsqrt
        bytes_accessed=sum(int(a.nbytes) for a in trunk_inputs)
        + batch * HIDDEN * 2,
    )
    h = pl.pallas_call(
        trunk_kernel,
        out_shape=jax.ShapeDtypeStruct((batch, HIDDEN), jnp.bfloat16),
        cost_estimate=trunk_cost,
    )(*trunk_inputs)

    # ---- head: Linear(1024, out_dim) + Tanh, streamed over lane-dense N tiles
    vmem_cap = _vmem_capacity_bytes()
    tn = _pick_n_tile(out_dim, _max_n_tile(vmem_cap))
    n_tiles = pl.cdiv(out_dim, tn)

    in_specs = [
        _spec((batch, HIDDEN), lambda j: (0, 0), buffer_count=1),  # h: resident
        _spec((HIDDEN, tn), lambda j: (0, j), buffer_count=3),     # w5: deep stream
        _spec((1, tn), lambda j: (0, j)),                          # b5
    ]
    out_spec = pl.BlockSpec((batch, tn), lambda j: (0, j))

    head_vmem = (batch * HIDDEN * 2            # h (single buffer)
                 + 3 * HIDDEN * tn * 2         # w5 tiles, 3-deep
                 + 2 * tn * 4                  # b5 tiles
                 + 2 * batch * tn * 4          # out tiles
                 + (4 << 20))                  # headroom
    vmem_limit = int(min(head_vmem, vmem_cap))

    head_cost = pl.CostEstimate(
        flops=2 * batch * HIDDEN * out_dim,
        transcendentals=batch * out_dim,       # tanh
        bytes_accessed=batch * HIDDEN * 2 + int(w5.nbytes) + int(b5.nbytes)
        + batch * out_dim * 4,
    )

    out = pl.pallas_call(
        head_kernel,
        out_shape=jax.ShapeDtypeStruct((batch, out_dim), jnp.float32),
        grid_spec=pl.GridSpec(grid=(n_tiles,),
                              in_specs=in_specs,
                              out_specs=out_spec),
        compiler_params=pltpu.CompilerParams(
            # N tiles are fully independent -> shardable across both TCs on v7x.
            dimension_semantics=("parallel",),
            vmem_limit_bytes=vmem_limit,
        ),
        cost_estimate=head_cost,
    )(h, w5, b5)

    return out.reshape(batch, *img_shape)


# ----------------------------------------------------------------------------
# Pure-JAX reference (identical mixed-precision recipe)
# ----------------------------------------------------------------------------
def generator_reference(z, params, img_shape):
    (w1, b1,
     w2, b2, g2, be2,
     w3, b3, g3, be3,
     w4, b4, g4, be4,
     w5, b5) = params

    def mm(x, w):
        return jnp.dot(x.astype(jnp.bfloat16), w,
                       preferred_element_type=jnp.float32)

    h = _leaky_relu(mm(z, w1) + b1)
    h = _leaky_relu(_batchnorm_train(mm(h, w2) + b2, g2, be2))
    h = _leaky_relu(_batchnorm_train(mm(h, w3) + b3, g3, be3))
    h = _leaky_relu(_batchnorm_train(mm(h, w4) + b4, g4, be4))
    h = jnp.tanh(mm(h, w5) + b5)
    return h.reshape(z.shape[0], *img_shape)


if __name__ == "__main__":
    latent_dim = 32
    img_shape = (3, 32, 32)     # (C, H, W) -> prod = 3072 (exercises N tiling)
    batch = 16                  # fills a bf16 sublane tile; weight DMA amortized

    key = jax.random.PRNGKey(0)
    kz, kp = jax.random.split(key)
    z = jax.random.normal(kz, (batch, latent_dim), jnp.float32)
    params = init_params(kp, latent_dim, img_shape)

    img = jax.block_until_ready(generator_forward(z, params, img_shape))
    ref = jax.block_until_ready(generator_reference(z, params, img_shape))

    assert img.shape == (batch, *img_shape), img.shape
    np.testing.assert_allclose(np.asarray(img), np.asarray(ref),
                               rtol=1e-2, atol=1e-2)

    print("KERNEL_OK")
</pallas_src>

<mosaic_0001>
module attributes {stable_mosaic.version = 11 : i64} {
  func.func @trunk_kernel(%arg0: memref<16x32xbf16, #tpu.memory_space<vmem>>, %arg1: memref<32x128xbf16, #tpu.memory_space<vmem>>, %arg2: memref<1x128xf32, #tpu.memory_space<vmem>>, %arg3: memref<128x256xbf16, #tpu.memory_space<vmem>>, %arg4: memref<1x256xf32, #tpu.memory_space<vmem>>, %arg5: memref<1x256xf32, #tpu.memory_space<vmem>>, %arg6: memref<1x256xf32, #tpu.memory_space<vmem>>, %arg7: memref<256x512xbf16, #tpu.memory_space<vmem>>, %arg8: memref<1x512xf32, #tpu.memory_space<vmem>>, %arg9: memref<1x512xf32, #tpu.memory_space<vmem>>, %arg10: memref<1x512xf32, #tpu.memory_space<vmem>>, %arg11: memref<512x1024xbf16, #tpu.memory_space<vmem>>, %arg12: memref<1x1024xf32, #tpu.memory_space<vmem>>, %arg13: memref<1x1024xf32, #tpu.memory_space<vmem>>, %arg14: memref<1x1024xf32, #tpu.memory_space<vmem>>, %arg15: memref<16x1024xbf16, #tpu.memory_space<vmem>>) attributes {dimension_semantics = [], scalar_prefetch = 0 : i64, scratch_operands = 0 : i64, tpu.core_type = #tpu.core_type<tc>} {
    %c0 = arith.constant 0 : index
    %c0_0 = arith.constant 0 : index
    %0 = vector.load %arg0[%c0, %c0_0] : memref<16x32xbf16, #tpu.memory_space<vmem>>, vector<16x32xbf16>
    %c0_1 = arith.constant 0 : index
    %c0_2 = arith.constant 0 : index
    %1 = vector.load %arg1[%c0_1, %c0_2] : memref<32x128xbf16, #tpu.memory_space<vmem>>, vector<32x128xbf16>
    %cst = arith.constant dense<0.000000e+00> : vector<16x128xf32>
    %2 = tpu.matmul %0, %1, %cst {dimension_numbers = #tpu.dot_dimension_numbers<[1], [0], [0], [1], [0, 0, 1, 1], [], []>} : vector<16x32xbf16>, vector<32x128xbf16>, vector<16x128xf32> -> vector<16x128xf32>
    %c0_3 = arith.constant 0 : index
    %c0_4 = arith.constant 0 : index
    %3 = vector.load %arg2[%c0_3, %c0_4] : memref<1x128xf32, #tpu.memory_space<vmem>>, vector<1x128xf32>
    %4 = vector.broadcast %3 : vector<1x128xf32> to vector<16x128xf32>
    %5 = arith.addf %2, %4 : vector<16x128xf32>
    %cst_5 = arith.constant 0.000000e+00 : f32
    %6 = vector.broadcast %cst_5 : f32 to vector<16x128xf32>
    %7 = arith.cmpf oge, %5, %6 : vector<16x128xf32>
    %cst_6 = arith.constant 2.000000e-01 : f32
    %8 = vector.broadcast %cst_6 : f32 to vector<16x128xf32>
    %9 = arith.mulf %8, %5 : vector<16x128xf32>
    %10 = arith.select %7, %5, %9 : vector<16x128xi1>, vector<16x128xf32>
    %11 = arith.truncf %10 : vector<16x128xf32> to vector<16x128xbf16>
    %c0_7 = arith.constant 0 : index
    %c0_8 = arith.constant 0 : index
    %12 = vector.load %arg3[%c0_7, %c0_8] : memref<128x256xbf16, #tpu.memory_space<vmem>>, vector<128x256xbf16>
    %cst_9 = arith.constant dense<0.000000e+00> : vector<16x256xf32>
    %13 = tpu.matmul %11, %12, %cst_9 {dimension_numbers = #tpu.dot_dimension_numbers<[1], [0], [0], [1], [0, 0, 1, 1], [], []>} : vector<16x128xbf16>, vector<128x256xbf16>, vector<16x256xf32> -> vector<16x256xf32>
    %c0_10 = arith.constant 0 : index
    %c0_11 = arith.constant 0 : index
    %14 = vector.load %arg4[%c0_10, %c0_11] : memref<1x256xf32, #tpu.memory_space<vmem>>, vector<1x256xf32>
    %15 = vector.broadcast %14 : vector<1x256xf32> to vector<16x256xf32>
    %16 = arith.addf %13, %15 : vector<16x256xf32>
    %c0_12 = arith.constant 0 : index
    %c0_13 = arith.constant 0 : index
    %17 = vector.load %arg5[%c0_12, %c0_13] : memref<1x256xf32, #tpu.memory_space<vmem>>, vector<1x256xf32>
    %c0_14 = arith.constant 0 : index
    %c0_15 = arith.constant 0 : index
    %18 = vector.load %arg6[%c0_14, %c0_15] : memref<1x256xf32, #tpu.memory_space<vmem>>, vector<1x256xf32>
    %cst_16 = arith.constant dense<0.000000e+00> : vector<256xf32>
    %19 = vector.multi_reduction <add>, %16, %cst_16 [0] : vector<16x256xf32> to vector<256xf32>
    %20 = vector.shape_cast %19 : vector<256xf32> to vector<1x256xf32>
    %cst_17 = arith.constant 1.600000e+01 : f32
    %21 = vector.broadcast %cst_17 : f32 to vector<1x256xf32>
    %22 = arith.divf %20, %21 : vector<1x256xf32>
    %23 = vector.broadcast %22 : vector<1x256xf32> to vector<16x256xf32>
    %24 = arith.subf %16, %23 : vector<16x256xf32>
    %25 = arith.mulf %24, %24 : vector<16x256xf32>
    %cst_18 = arith.constant dense<0.000000e+00> : vector<256xf32>
    %26 = vector.multi_reduction <add>, %25, %cst_18 [0] : vector<16x256xf32> to vector<256xf32>
    %27 = vector.shape_cast %26 : vector<256xf32> to vector<1x256xf32>
    %cst_19 = arith.constant 1.600000e+01 : f32
    %28 = vector.broadcast %cst_19 : f32 to vector<1x256xf32>
    %29 = arith.divf %27, %28 : vector<1x256xf32>
    %30 = vector.broadcast %22 : vector<1x256xf32> to vector<16x256xf32>
    %31 = arith.subf %16, %30 : vector<16x256xf32>
    %cst_20 = arith.constant 8.000000e-01 : f32
    %32 = vector.broadcast %cst_20 : f32 to vector<1x256xf32>
    %33 = arith.addf %29, %32 : vector<1x256xf32>
    %34 = math.rsqrt %33 : vector<1x256xf32>
    %35 = vector.broadcast %34 : vector<1x256xf32> to vector<16x256xf32>
    %36 = arith.mulf %31, %35 : vector<16x256xf32>
    %37 = vector.broadcast %17 : vector<1x256xf32> to vector<16x256xf32>
    %38 = arith.mulf %36, %37 : vector<16x256xf32>
    %39 = vector.broadcast %18 : vector<1x256xf32> to vector<16x256xf32>
    %40 = arith.addf %38, %39 : vector<16x256xf32>
    %cst_21 = arith.constant 0.000000e+00 : f32
    %41 = vector.broadcast %cst_21 : f32 to vector<16x256xf32>
    %42 = arith.cmpf oge, %40, %41 : vector<16x256xf32>
    %cst_22 = arith.constant 2.000000e-01 : f32
    %43 = vector.broadcast %cst_22 : f32 to vector<16x256xf32>
    %44 = arith.mulf %43, %40 : vector<16x256xf32>
    %45 = arith.select %42, %40, %44 : vector<16x256xi1>, vector<16x256xf32>
    %46 = arith.truncf %45 : vector<16x256xf32> to vector<16x256xbf16>
    %c0_23 = arith.constant 0 : index
    %c0_24 = arith.constant 0 : index
    %47 = vector.load %arg7[%c0_23, %c0_24] : memref<256x512xbf16, #tpu.memory_space<vmem>>, vector<256x512xbf16>
    %cst_25 = arith.constant dense<0.000000e+00> : vector<16x512xf32>
    %48 = tpu.matmul %46, %47, %cst_25 {dimension_numbers = #tpu.dot_dimension_numbers<[1], [0], [0], [1], [0, 0, 1, 1], [], []>} : vector<16x256xbf16>, vector<256x512xbf16>, vector<16x512xf32> -> vector<16x512xf32>
    %c0_26 = arith.constant 0 : index
    %c0_27 = arith.constant 0 : index
    %49 = vector.load %arg8[%c0_26, %c0_27] : memref<1x512xf32, #tpu.memory_space<vmem>>, vector<1x512xf32>
    %50 = vector.broadcast %49 : vector<1x512xf32> to vector<16x512xf32>
    %51 = arith.addf %48, %50 : vector<16x512xf32>
    %c0_28 = arith.constant 0 : index
    %c0_29 = arith.constant 0 : index
    %52 = vector.load %arg9[%c0_28, %c0_29] : memref<1x512xf32, #tpu.memory_space<vmem>>, vector<1x512xf32>
    %c0_30 = arith.constant 0 : index
    %c0_31 = arith.constant 0 : index
    %53 = vector.load %arg10[%c0_30, %c0_31] : memref<1x512xf32, #tpu.memory_space<vmem>>, vector<1x512xf32>
    %cst_32 = arith.constant dense<0.000000e+00> : vector<512xf32>
    %54 = vector.multi_reduction <add>, %51, %cst_32 [0] : vector<16x512xf32> to vector<512xf32>
    %55 = vector.shape_cast %54 : vector<512xf32> to vector<1x512xf32>
    %cst_33 = arith.constant 1.600000e+01 : f32
    %56 = vector.broadcast %cst_33 : f32 to vector<1x512xf32>
    %57 = arith.divf %55, %56 : vector<1x512xf32>
    %58 = vector.broadcast %57 : vector<1x512xf32> to vector<16x512xf32>
    %59 = arith.subf %51, %58 : vector<16x512xf32>
    %60 = arith.mulf %59, %59 : vector<16x512xf32>
    %cst_34 = arith.constant dense<0.000000e+00> : vector<512xf32>
    %61 = vector.multi_reduction <add>, %60, %cst_34 [0] : vector<16x512xf32> to vector<512xf32>
    %62 = vector.shape_cast %61 : vector<512xf32> to vector<1x512xf32>
    %cst_35 = arith.constant 1.600000e+01 : f32
    %63 = vector.broadcast %cst_35 : f32 to vector<1x512xf32>
    %64 = arith.divf %62, %63 : vector<1x512xf32>
    %65 = vector.broadcast %57 : vector<1x512xf32> to vector<16x512xf32>
    %66 = arith.subf %51, %65 : vector<16x512xf32>
    %cst_36 = arith.constant 8.000000e-01 : f32
    %67 = vector.broadcast %cst_36 : f32 to vector<1x512xf32>
    %68 = arith.addf %64, %67 : vector<1x512xf32>
    %69 = math.rsqrt %68 : vector<1x512xf32>
    %70 = vector.broadcast %69 : vector<1x512xf32> to vector<16x512xf32>
    %71 = arith.mulf %66, %70 : vector<16x512xf32>
    %72 = vector.broadcast %52 : vector<1x512xf32> to vector<16x512xf32>
    %73 = arith.mulf %71, %72 : vector<16x512xf32>
    %74 = vector.broadcast %53 : vector<1x512xf32> to vector<16x512xf32>
    %75 = arith.addf %73, %74 : vector<16x512xf32>
    %cst_37 = arith.constant 0.000000e+00 : f32
    %76 = vector.broadcast %cst_37 : f32 to vector<16x512xf32>
    %77 = arith.cmpf oge, %75, %76 : vector<16x512xf32>
    %cst_38 = arith.constant 2.000000e-01 : f32
    %78 = vector.broadcast %cst_38 : f32 to vector<16x512xf32>
    %79 = arith.mulf %78, %75 : vector<16x512xf32>
    %80 = arith.select %77, %75, %79 : vector<16x512xi1>, vector<16x512xf32>
    %81 = arith.truncf %80 : vector<16x512xf32> to vector<16x512xbf16>
    %c0_39 = arith.constant 0 : index
    %c0_40 = arith.constant 0 : index
    %82 = vector.load %arg11[%c0_39, %c0_40] : memref<512x1024xbf16, #tpu.memory_space<vmem>>, vector<512x1024xbf16>
    %cst_41 = arith.constant dense<0.000000e+00> : vector<16x1024xf32>
    %83 = tpu.matmul %81, %82, %cst_41 {dimension_numbers = #tpu.dot_dimension_numbers<[1], [0], [0], [1], [0, 0, 1, 1], [], []>} : vector<16x512xbf16>, vector<512x1024xbf16>, vector<16x1024xf32> -> vector<16x1024xf32>
    %c0_42 = arith.constant 0 : index
    %c0_43 = arith.constant 0 : index
    %84 = vector.load %arg12[%c0_42, %c0_43] : memref<1x1024xf32, #tpu.memory_space<vmem>>, vector<1x1024xf32>
    %85 = vector.broadcast %84 : vector<1x1024xf32> to vector<16x1024xf32>
    %86 = arith.addf %83, %85 : vector<16x1024xf32>
    %c0_44 = arith.constant 0 : index
    %c0_45 = arith.constant 0 : index
    %87 = vector.load %arg13[%c0_44, %c0_45] : memref<1x1024xf32, #tpu.memory_space<vmem>>, vector<1x1024xf32>
    %c0_46 = arith.constant 0 : index
    %c0_47 = arith.constant 0 : index
    %88 = vector.load %arg14[%c0_46, %c0_47] : memref<1x1024xf32, #tpu.memory_space<vmem>>, vector<1x1024xf32>
    %cst_48 = arith.constant dense<0.000000e+00> : vector<1024xf32>
    %89 = vector.multi_reduction <add>, %86, %cst_48 [0] : vector<16x1024xf32> to vector<1024xf32>
    %90 = vector.shape_cast %89 : vector<1024xf32> to vector<1x1024xf32>
    %cst_49 = arith.constant 1.600000e+01 : f32
    %91 = vector.broadcast %cst_49 : f32 to vector<1x1024xf32>
    %92 = arith.divf %90, %91 : vector<1x1024xf32>
    %93 = vector.broadcast %92 : vector<1x1024xf32> to vector<16x1024xf32>
    %94 = arith.subf %86, %93 : vector<16x1024xf32>
    %95 = arith.mulf %94, %94 : vector<16x1024xf32>
    %cst_50 = arith.constant dense<0.000000e+00> : vector<1024xf32>
    %96 = vector.multi_reduction <add>, %95, %cst_50 [0] : vector<16x1024xf32> to vector<1024xf32>
    %97 = vector.shape_cast %96 : vector<1024xf32> to vector<1x1024xf32>
    %cst_51 = arith.constant 1.600000e+01 : f32
    %98 = vector.broadcast %cst_51 : f32 to vector<1x1024xf32>
    %99 = arith.divf %97, %98 : vector<1x1024xf32>
    %100 = vector.broadcast %92 : vector<1x1024xf32> to vector<16x1024xf32>
    %101 = arith.subf %86, %100 : vector<16x1024xf32>
    %cst_52 = arith.constant 8.000000e-01 : f32
    %102 = vector.broadcast %cst_52 : f32 to vector<1x1024xf32>
    %103 = arith.addf %99, %102 : vector<1x1024xf32>
    %104 = math.rsqrt %103 : vector<1x1024xf32>
    %105 = vector.broadcast %104 : vector<1x1024xf32> to vector<16x1024xf32>
    %106 = arith.mulf %101, %105 : vector<16x1024xf32>
    %107 = vector.broadcast %87 : vector<1x1024xf32> to vector<16x1024xf32>
    %108 = arith.mulf %106, %107 : vector<16x1024xf32>
    %109 = vector.broadcast %88 : vector<1x1024xf32> to vector<16x1024xf32>
    %110 = arith.addf %108, %109 : vector<16x1024xf32>
    %cst_53 = arith.constant 0.000000e+00 : f32
    %111 = vector.broadcast %cst_53 : f32 to vector<16x1024xf32>
    %112 = arith.cmpf oge, %110, %111 : vector<16x1024xf32>
    %cst_54 = arith.constant 2.000000e-01 : f32
    %113 = vector.broadcast %cst_54 : f32 to vector<16x1024xf32>
    %114 = arith.mulf %113, %110 : vector<16x1024xf32>
    %115 = arith.select %112, %110, %114 : vector<16x1024xi1>, vector<16x1024xf32>
    %116 = arith.truncf %115 : vector<16x1024xf32> to vector<16x1024xbf16>
    %c0_55 = arith.constant 0 : index
    %c0_56 = arith.constant 0 : index
    %117 = vector.load %arg15[%c0_55, %c0_56] : memref<16x1024xbf16, #tpu.memory_space<vmem>>, vector<16x1024xbf16>
    tpu.vector_store %arg15[%c0_55, %c0_56], %116 {strides = array<i32>} : memref<16x1024xbf16, #tpu.memory_space<vmem>>, vector<16x1024xbf16>,
    return
  }
}

</mosaic_0001>

<bundles_post_ra>
// kernel: tpu_custom_call.1
= control target key start
LH: loop header
LB: loop body
LE: loop exit
PB: predicated region body
PF: predicated region fallthrough
CT: control target
= control target key end

     0   :  { %20 = vsyncpa [#allocation3], 0  ;;  %s4742_s0 = inlined_call_operand.hbm [shape: bf16[16,32], index: 0, kind: input, shape index: {}]   ;;  %s4743_s1 = inlined_call_operand.hbm [shape: bf16[32,128], index: 1, kind: input, shape index: {}]   ;;  %s4744_s2 = inlined_call_operand.hbm [shape: f32[1,128], index: 2, kind: input, shape index: {}]   ;;  %s4745_s3 = inlined_call_operand.hbm [shape: bf16[128,256], index: 3, kind: input, shape index: {}]   ;;  %s4746_s4 = inlined_call_operand.hbm [shape: f32[1,256], index: 4, kind: input, shape index: {}]   ;;  %s4747_s5 = inlined_call_operand.hbm [shape: f32[1,256], index: 5, kind: input, shape index: {}]   ;;  %s4748_s6 = inlined_call_operand.hbm [shape: f32[1,256], index: 6, kind: input, shape index: {}]   ;;  %s4749_s7 = inlined_call_operand.hbm [shape: bf16[256,512], index: 7, kind: input, shape index: {}]   ;;  %s4750_s8 = inlined_call_operand.hbm [shape: f32[1,512], index: 8, kind: input, shape index: {}]   ;;  %s4751_s9 = inlined_call_operand.hbm [shape: f32[1,512], index: 9, kind: input, shape index: {}]   ;;  %s4752_s10 = inlined_call_operand.hbm [shape: f32[1,512], index: 10, kind: input, shape index: {}]   ;;  %s4753_s11 = inlined_call_operand.hbm [shape: bf16[512,1024], index: 11, kind: input, shape index: {}]   ;;  %s4754_s12 = inlined_call_operand.vmem [shape: f32[1,1024], index: 12, kind: input, shape index: {}]   ;;  %s4755_s13 = inlined_call_operand.vmem [shape: f32[1,1024], index: 13, kind: input, shape index: {}]   ;;  %s4756_s14 = inlined_call_operand.vmem [shape: f32[1,1024], index: 14, kind: input, shape index: {}]   ;;  %s4757_s15 = inlined_call_operand.hbm [shape: bf16[16,1024], index: 15, kind: output, shape index: {}]  }
   0x1   :  { %21 = vsyncpa [#allocation6], 0 }
   0x2   :  { %22 = vsyncpa [#allocation9], 0 }
   0x3   :  { %23 = vsyncpa [#allocation12], 0 }
   0x4   :  { %24 = vsyncpa [#allocation15], 0 }
   0x5   :  { %25 = vsyncpa [#allocation18], 0 }
   0x6   :  { %26 = vsyncpa [#allocation21], 0 }
   0x7   :  { %27 = vsyncpa [#allocation4], 0  ;;  %s4381_s18 = smov [#allocation5]   ;;  %s4382_s20 = smov [#allocation8]  }
   0x8   :  { %s45_s19 = sshll.u32 %s4381_s18, 4  ;;  %s67_s21 = sshll.u32 %s4382_s20, 4  ;;  %s46_s19 = int_to_ptr.vmem [resolvable:$true] %s45_s19  ;;  %s68_s21 = int_to_ptr.vmem [resolvable:$true] %s67_s21 }
   0x9   :  { %s4113_s22 = scalar_lea.vmem %s46_s19, 256  ;;  %p4118_p1 = scmp.lt.s32.totalorder %s46_s19, %s46_s19 }
   0xa   :  { %p4114_p0 = scmp.ne.s32.totalorder %s46_s19, %s4113_s22  ;;  %p4119_p2 = scmp.lt.s32.totalorder %s4113_s22, %s4113_s22 }
   0xc   :  { %p4120_p3 = por %p4119_p2, %p4118_p1 }
   0xe   :  { %p4121_p4 = pnand %p4120_p3, %p4114_p0 }
  0x10   :  { %4124 = shalt.err (!%p4121_p4)
}
  0x11   :  { %s4383_s23 = smov 64   ;;  %s4384_s24 = smov 4  }
  0x12   :  { %51 = dma.hbm_to_vmem [thread:$0]  %s4743_s1, 256, %s46_s19, [#allocation6], %s4383_s23, %s4383_s23, %s4384_s24  }
  0x13   :  { %s4133_s27 = scalar_lea.vmem %s68_s21, 2048  ;;  %p4138_p6 = scmp.lt.s32.totalorder %s68_s21, %s68_s21 }
  0x14   :  { %p4134_p5 = scmp.ne.s32.totalorder %s68_s21, %s4133_s27  ;;  %p4139_p7 = scmp.lt.s32.totalorder %s4133_s27, %s4133_s27 }
  0x16   :  { %p4140_p8 = por %p4139_p7, %p4138_p6 }
  0x18   :  { %p4141_p9 = pnand %p4140_p8, %p4134_p5 }
  0x1a   :  { %4144 = shalt.err (!%p4141_p9)
}
  0x1b   :  { %s4385_s28 = smov 128   ;;  %s4386_s29 = smov 8  }
  0x1c   :  { %73 = dma.hbm_to_vmem [thread:$0]  %s4745_s3, 2048, %s68_s21, [#allocation9], %s4385_s28, %s4385_s28, %s4386_s29  }
  0x1d   :  { %s4387_s17 = smov [#allocation11]   ;;  %s4388_s20 = smov [#allocation14]  }
  0x1e   :  { %s90_s18 = sshll.u32 %s4387_s17, 4  ;;  %s109_s22 = sshll.u32 %s4388_s20, 4  ;;  %s91_s18 = int_to_ptr.vmem [resolvable:$true] %s90_s18  ;;  %s110_s22 = int_to_ptr.vmem [resolvable:$true] %s109_s22 }
  0x1f   :  { %s4153_s1 = scalar_lea.vmem %s91_s18, 32  ;;  %p4158_p11 = scmp.lt.s32.totalorder %s91_s18, %s91_s18 }
  0x20   :  { %p4154_p10 = scmp.ne.s32.totalorder %s91_s18, %s4153_s1  ;;  %p4159_p12 = scmp.lt.s32.totalorder %s4153_s1, %s4153_s1 }
  0x22   :  { %p4160_p13 = por %p4159_p12, %p4158_p11 }
  0x24   :  { %p4161_p0 = pnand %p4160_p13, %p4154_p10 }
  0x26   :  { %4164 = shalt.err (!%p4161_p0)
}
  0x27   :  { %93 = dma.hbm_to_vmem [thread:$0]  %s4747_s5, 32, %s91_s18, [#allocation12]  }
  0x28   :  { %s4173_s26 = scalar_lea.vmem %s110_s22, 8192  ;;  %p4178_p2 = scmp.lt.s32.totalorder %s110_s22, %s110_s22 }
  0x29   :  { %p4174_p1 = scmp.ne.s32.totalorder %s110_s22, %s4173_s26  ;;  %p4179_p3 = scmp.lt.s32.totalorder %s4173_s26, %s4173_s26 }
  0x2b   :  { %p4180_p4 = por %p4179_p3, %p4178_p2 }
  0x2d   :  { %p4181_p5 = pnand %p4180_p4, %p4174_p1 }
  0x2f   :  { %4184 = shalt.err (!%p4181_p5)
}
  0x30   :  { %s4389_s3 = smov 256   ;;  %s4390_s21 = smov 16  }
  0x31   :  { %115 = dma.hbm_to_vmem [thread:$0]  %s4749_s7, 8192, %s110_s22, [#allocation15], %s4389_s3, %s4389_s3, %s4390_s21  }
  0x32   :  { %s4391_s29 = smov [#allocation17]   ;;  %s4392_s16 = smov [#allocation2]  }
  0x33   :  { %s132_s30 = sshll.u32 %s4391_s29, 4  ;;  %s33_s17 = sshll.u32 %s4392_s16, 4  ;;  %s133_s30 = int_to_ptr.vmem [resolvable:$true] %s132_s30  ;;  %s34_s17 = int_to_ptr.vmem [resolvable:$true] %s33_s17 }
  0x34   :  { %s4193_s5 = scalar_lea.vmem %s133_s30, 64  ;;  %p4198_p7 = scmp.lt.s32.totalorder %s133_s30, %s133_s30 }
  0x35   :  { %p4194_p6 = scmp.ne.s32.totalorder %s133_s30, %s4193_s5  ;;  %p4199_p8 = scmp.lt.s32.totalorder %s4193_s5, %s4193_s5 }
  0x37   :  { %p4200_p9 = por %p4199_p8, %p4198_p7 }
  0x39   :  { %p4201_p10 = pnand %p4200_p9, %p4194_p6 }
  0x3b   :  { %4204 = shalt.err (!%p4201_p10)
}
  0x3c   :  { %135 = dma.hbm_to_vmem [thread:$0]  %s4751_s9, 64, %s133_s30, [#allocation18]  }
  0x3d   :  { %s4213_s1 = scalar_lea.vmem %s34_s17, 128  ;;  %p4218_p12 = scmp.lt.s32.totalorder %s34_s17, %s34_s17 }
  0x3e   :  { %p4214_p11 = scmp.ne.s32.totalorder %s34_s17, %s4213_s1  ;;  %p4219_p13 = scmp.lt.s32.totalorder %s4213_s1, %s4213_s1 }
  0x40   :  { %p4220_p0 = por %p4219_p13, %p4218_p12 }
  0x42   :  { %p4221_p1 = pnand %p4220_p0, %p4214_p11 }
  0x44   :  { %4224 = shalt.err (!%p4221_p1)
}
  0x45   :  { %39 = dma.hbm_to_vmem [thread:$0]  %s4742_s0, 128, %s34_s17, [#allocation3], %s4383_s23, %s4383_s23, %s4384_s24  }
  0x46   :  { %s4393_s19 = smov [#allocation7]   ;;  %s4394_s26 = smov [#allocation10]  }
  0x47   :  { %s58_s25 = sshll.u32 %s4393_s19, 4  ;;  %s80_s3 = sshll.u32 %s4394_s26, 4  ;;  %s59_s25 = int_to_ptr.vmem [resolvable:$true] %s58_s25  ;;  %s81_s3 = int_to_ptr.vmem [resolvable:$true] %s80_s3 }
  0x48   :  { %s4233_s9 = scalar_lea.vmem %s59_s25, 16  ;;  %s4237_s21 = scalar_lea.vmem %s59_s25, 32 }
  0x49   :  { %p4234_p2 = scmp.ne.s32.totalorder %s59_s25, %s4233_s9  ;;  %p4238_p3 = scmp.lt.s32.totalorder %s59_s25, %s59_s25 }
  0x4a   :  { %p4239_p4 = scmp.lt.s32.totalorder %s4237_s21, %s4233_s9 }
  0x4c   :  { %p4240_p5 = por %p4239_p4, %p4238_p3 }
  0x4e   :  { %p4241_p6 = pnand %p4240_p5, %p4234_p2 }
  0x50   :  { %4244 = shalt.err (!%p4241_p6)
}
  0x51   :  { %61 = dma.hbm_to_vmem [thread:$0]  %s4744_s2, 16, %s59_s25, [#allocation6]  }
  0x52   :  { %s4253_s29 = scalar_lea.vmem %s81_s3, 32  ;;  %p4258_p8 = scmp.lt.s32.totalorder %s81_s3, %s81_s3 }
  0x53   :  { %p4254_p7 = scmp.ne.s32.totalorder %s81_s3, %s4253_s29  ;;  %p4259_p9 = scmp.lt.s32.totalorder %s4253_s29, %s4253_s29 }
  0x55   :  { %p4260_p10 = por %p4259_p9, %p4258_p8 }
  0x57   :  { %p4261_p11 = pnand %p4260_p10, %p4254_p7 }
  0x59   :  { %4264 = shalt.err (!%p4261_p11)
}
  0x5a   :  { %83 = dma.hbm_to_vmem [thread:$0]  %s4746_s4, 32, %s81_s3, [#allocation9]  }
  0x5b   :  { %s4395_s24 = smov [#allocation13]   ;;  %s4396_s16 = smov [#allocation16]  }
  0x5c   :  { %s100_s30 = sshll.u32 %s4395_s24, 4  ;;  %s122_s17 = sshll.u32 %s4396_s16, 4  ;;  %s101_s30 = int_to_ptr.vmem [resolvable:$true] %s100_s30  ;;  %s123_s17 = int_to_ptr.vmem [resolvable:$true] %s122_s17 }
  0x5d   :  { %s4273_s5 = scalar_lea.vmem %s101_s30, 32  ;;  %p4278_p13 = scmp.lt.s32.totalorder %s101_s30, %s101_s30 }
  0x5e   :  { %p4274_p12 = scmp.ne.s32.totalorder %s101_s30, %s4273_s5  ;;  %p4279_p0 = scmp.lt.s32.totalorder %s4273_s5, %s4273_s5 }
  0x60   :  { %p4280_p1 = por %p4279_p0, %p4278_p13 }
  0x62   :  { %p4281_p2 = pnand %p4280_p1, %p4274_p12 }
  0x64   :  { %4284 = shalt.err (!%p4281_p2)
}
  0x65   :  { %103 = dma.hbm_to_vmem [thread:$0]  %s4748_s6, 32, %s101_s30, [#allocation12]  }
  0x66   :  { %s4293_s20 = scalar_lea.vmem %s123_s17, 64  ;;  %p4298_p4 = scmp.lt.s32.totalorder %s123_s17, %s123_s17 }
  0x67   :  { %p4294_p3 = scmp.ne.s32.totalorder %s123_s17, %s4293_s20  ;;  %p4299_p5 = scmp.lt.s32.totalorder %s4293_s20, %s4293_s20 }
  0x69   :  { %p4300_p6 = por %p4299_p5, %p4298_p4 }
  0x6b   :  { %p4301_p7 = pnand %p4300_p6, %p4294_p3 }
  0x6d   :  { %4304 = shalt.err (!%p4301_p7)
}
  0x6e   :  { %125 = dma.hbm_to_vmem [thread:$0]  %s4750_s8, 64, %s123_s17, [#allocation15]  }
  0x6f   :  { %s4397_s7 = smov [#allocation19]   ;;  %s4398_s19 = smov [#allocation20]  }
  0x70   :  { %s142_s22 = sshll.u32 %s4397_s7, 4  ;;  %s151_s25 = sshll.u32 %s4398_s19, 4  ;;  %s143_s22 = int_to_ptr.vmem [resolvable:$true] %s142_s22  ;;  %s152_s25 = int_to_ptr.vmem [resolvable:$true] %s151_s25 }
  0x71   :  { %s4313_s26 = scalar_lea.vmem %s143_s22, 64  ;;  %p4318_p9 = scmp.lt.s32.totalorder %s143_s22, %s143_s22 }
  0x72   :  { %p4314_p8 = scmp.ne.s32.totalorder %s143_s22, %s4313_s26  ;;  %p4319_p10 = scmp.lt.s32.totalorder %s4313_s26, %s4313_s26 }
  0x74   :  { %p4320_p11 = por %p4319_p10, %p4318_p9 }
  0x76   :  { %p4321_p12 = pnand %p4320_p11, %p4314_p8 }
  0x78   :  { %4324 = shalt.err (!%p4321_p12)
}
  0x79   :  { %145 = dma.hbm_to_vmem [thread:$0]  %s4752_s10, 64, %s143_s22, [#allocation18]  }
  0x7a   :  { %s4333_s9 = scalar_lea.vmem %s152_s25, 32768  ;;  %p4338_p0 = scmp.lt.s32.totalorder %s152_s25, %s152_s25 }
  0x7b   :  { %p4334_p13 = scmp.ne.s32.totalorder %s152_s25, %s4333_s9  ;;  %p4339_p1 = scmp.lt.s32.totalorder %s4333_s9, %s4333_s9 }
  0x7d   :  { %p4340_p2 = por %p4339_p1, %p4338_p0 }
  0x7f   :  { %p4341_p3 = pnand %p4340_p2, %p4334_p13 }
  0x81   :  { %4344 = shalt.err (!%p4341_p3)
}
  0x82   :  { %s4399_s8 = smov 512   ;;  %s4400_s21 = smov 32  }
  0x83   :  { %157 = dma.hbm_to_vmem [thread:$0]  %s4753_s11, 32768, %s152_s25, [#allocation21], %s4399_s8, %s4399_s8, %s4400_s21  }
  0x84   :  { %4365 = dma.done.wait [#allocation3], 128  }
  0x85   :  { %4366 = vsyncadd [#allocation3], 4294967168 }
  0x86   :  { %4367 = dma.done.wait [#allocation6], 272  }
  0x87   :  { %4368 = vsyncadd [#allocation6], 4294967024 }
  0x88   :  { %4369 = dma.done.wait [#allocation9], 2080  }
  0x89   :  { %4370 = vsyncadd [#allocation9], 4294965216 }
  0x8a   :  { %4371 = dma.done.wait [#allocation12], 64  }
  0x8b   :  { %4372 = vsyncadd [#allocation12], 4294967232 }
  0x8c   :  { %4373 = dma.done.wait [#allocation15], 8256  }
  0x8d   :  { %4374 = vsyncadd [#allocation15], 4294959040 }
  0x8e   :  { %4375 = dma.done.wait [#allocation18], 128  }
  0x8f   :  { %4376 = vsyncadd [#allocation18], 4294967168 }
  0x90   :  { %4377 = dma.done.wait [#allocation21], 32768  }
  0x91   :  { %4378 = vsyncadd [#allocation21], 4294934528  ;;  %v4401_v0 = vmov 0.0   ;;  %vm4402_vm0 = vmmov 0   ;;  %v3954_v1 = vld [vmem:[#allocation5 + $0x8] sm:$0xff]   ;;  %v3955_v2 = vld [vmem:[#allocation5] sm:$0xff]  }
  0x92   :  { %3922 = vmatprep.subr.bf16.mxu0 %v4401_v0  ;;  %3926 = vmatprep.mubr.msk.bf16.mxu0 %vm4402_vm0, %v4401_v0  ;;  %v3957_v3 = vld [vmem:[#allocation8 + $0x74] ss:$8 sps:$4 sm:$0xff]   ;;  %v3959_v4 = vld [vmem:[#allocation8 + $0x70] ss:$8 sps:$4 sm:$0xff]   ;;  %v3956_v5 = vld [vmem:[#allocation2] sm:$0xff]   ;;  %vm231_vm1 = vcmask 261120  }
  0x93   :  { %3923 = vmatpush3.bf16.msra.mxu0 %v3954_v1  ;;  %391 = vmatprep.subr.bf16.mxu1 %v3957_v3  ;;  %v3960_v6 = vld [vmem:[#allocation8 + $0x64] ss:$8 sps:$4 sm:$0xff]   ;;  %v3962_v7 = vld [vmem:[#allocation8 + $0x60] ss:$8 sps:$4 sm:$0xff]   ;;  %v3963_v8 = vld [vmem:[#allocation8 + $0x54] ss:$8 sps:$4 sm:$0xff]  }
  0x94   :  { %3924 = vmatprep.subr.bf16.mxu0 %v4401_v0  ;;  %392 = vmatpush1.bf16.msra.mxu1 %v3959_v4  ;;  %v3965_v9 = vld [vmem:[#allocation8 + $0x50] ss:$8 sps:$4 sm:$0xff]   ;;  %v3966_v10 = vld [vmem:[#allocation8 + $0x44] ss:$8 sps:$4 sm:$0xff]   ;;  %v3968_v11 = vld [vmem:[#allocation8 + $0x40] ss:$8 sps:$4 sm:$0xff]  }
  0x95   :  { %393 = vmatprep.subr.bf16.mxu1 %v3960_v6  ;;  %v3969_v12 = vld [vmem:[#allocation8 + $0x34] ss:$8 sps:$4 sm:$0xff]   ;;  %v3971_v13 = vld [vmem:[#allocation8 + $0x30] ss:$8 sps:$4 sm:$0xff]   ;;  %v3972_v14 = vld [vmem:[#allocation8 + $0x24] ss:$8 sps:$4 sm:$0xff]  }
  0x96   :  { %v3974_v15 = vld [vmem:[#allocation8 + $0x20] ss:$8 sps:$4 sm:$0xff]   ;;  %v3975_v16 = vld [vmem:[#allocation8 + $0x14] ss:$8 sps:$4 sm:$0xff]   ;;  %v3977_v17 = vld [vmem:[#allocation8 + $0x10] ss:$8 sps:$4 sm:$0xff]  }
  0x97   :  { %3925 = vmatpush3.bf16.msra.mxu0 %v3955_v2  ;;  %v3978_v18 = vld [vmem:[#allocation8 + $0x4] ss:$8 sps:$4 sm:$0xff]   ;;  %v3980_v19 = vld [vmem:[#allocation8] ss:$8 sps:$4 sm:$0xff]   ;;  %v4403_v20 = vmov 0  }
  0x98   :  { %394 = vmatpush1.bf16.msra.mxu1 %v3962_v7  ;;  %423 = vmatprep.mubr.bf16.mxu1 %v4403_v20  ;;  %v3562_v21 = vld [vmem:[#allocation7] ss:$0 sm:$0xff]  ;;  %v3983_v33 = vld [vmem:[#allocation14 + $0xe4] ss:$16 sps:$4 sm:$0xff]   ;;  %v3986_v34 = vld [vmem:[#allocation14 + $0xec] ss:$16 sps:$4 sm:$0xff]  }
  0x99   :  { %395 = vmatprep.subr.bf16.mxu1 %v3963_v8  ;;  %v3981_v35 = vld [vmem:[#allocation14 + $0xe0] ss:$16 sps:$4 sm:$0xff]   ;;  %v3984_v36 = vld [vmem:[#allocation14 + $0xe8] ss:$16 sps:$4 sm:$0xff]   ;;  %935 = vmatprep.subr.bf16.mxu0 %v3983_v33  ;;  %v3989_v37 = vld [vmem:[#allocation14 + $0xc4] ss:$16 sps:$4 sm:$0xff]   ;;  %v301_v33 = vlaneseq }
  0x9a   :  { %3927 = vmatmul.mubr.msk.bf16.vlgmr.msra.gmra.mxu0 %vm231_vm1, %v3956_v5  ;;  %v3992_v38 = vld [vmem:[#allocation14 + $0xcc] ss:$16 sps:$4 sm:$0xff]   ;;  %v3987_v39 = vld [vmem:[#allocation14 + $0xc0] ss:$16 sps:$4 sm:$0xff]   ;;  %v3990_v40 = vld [vmem:[#allocation14 + $0xc8] ss:$16 sps:$4 sm:$0xff]  }
  0x9b   :  { %936 = vmatpush1.bf16.msra.mxu0 %v3981_v35  ;;  %v3995_v41 = vld [vmem:[#allocation14 + $0xa4] ss:$16 sps:$4 sm:$0xff]   ;;  %v3998_v42 = vld [vmem:[#allocation14 + $0xac] ss:$16 sps:$4 sm:$0xff]   ;;  %v3993_v43 = vld [vmem:[#allocation14 + $0xa0] ss:$16 sps:$4 sm:$0xff]  }
  0x9c   :  { %396 = vmatpush1.bf16.msra.mxu1 %v3965_v9  ;;  %937 = vmatprep.subr.bf16.mxu0 %v3989_v37  ;;  %v3996_v44 = vld [vmem:[#allocation14 + $0xa8] ss:$16 sps:$4 sm:$0xff]   ;;  %v4001_v45 = vld [vmem:[#allocation14 + $0x84] ss:$16 sps:$4 sm:$0xff]   ;;  %v4004_v46 = vld [vmem:[#allocation14 + $0x8c] ss:$16 sps:$4 sm:$0xff]  }
  0x9d   :  { %397 = vmatprep.subr.bf16.mxu1 %v3966_v10  ;;  %v3999_v47 = vld [vmem:[#allocation14 + $0x80] ss:$16 sps:$4 sm:$0xff]   ;;  %v4002_v48 = vld [vmem:[#allocation14 + $0x88] ss:$16 sps:$4 sm:$0xff]   ;;  %v4007_v49 = vld [vmem:[#allocation14 + $0x64] ss:$16 sps:$4 sm:$0xff]  }
  0x9e   :  { %v4010_v50 = vld [vmem:[#allocation14 + $0x6c] ss:$16 sps:$4 sm:$0xff]   ;;  %v4005_v51 = vld [vmem:[#allocation14 + $0x60] ss:$16 sps:$4 sm:$0xff]   ;;  %v4008_v52 = vld [vmem:[#allocation14 + $0x68] ss:$16 sps:$4 sm:$0xff]  }
  0x9f   :  { %938 = vmatpush1.bf16.msra.mxu0 %v3987_v39  ;;  %v4013_v53 = vld [vmem:[#allocation14 + $0x44] ss:$16 sps:$4 sm:$0xff]   ;;  %v4016_v54 = vld [vmem:[#allocation14 + $0x4c] ss:$16 sps:$4 sm:$0xff]   ;;  %v4011_v55 = vld [vmem:[#allocation14 + $0x40] ss:$16 sps:$4 sm:$0xff]  }
  0xa0   :  { %398 = vmatpush1.bf16.msra.mxu1 %v3968_v11  ;;  %939 = vmatprep.subr.bf16.mxu0 %v3995_v41  ;;  %v4014_v56 = vld [vmem:[#allocation14 + $0x48] ss:$16 sps:$4 sm:$0xff]   ;;  %v4019_v57 = vld [vmem:[#allocation14 + $0x24] ss:$16 sps:$4 sm:$0xff]   ;;  %v4022_v58 = vld [vmem:[#allocation14 + $0x2c] ss:$16 sps:$4 sm:$0xff]  }
  0xa1   :  { %399 = vmatprep.subr.bf16.mxu1 %v3969_v12  ;;  %v4017_v59 = vld [vmem:[#allocation14 + $0x20] ss:$16 sps:$4 sm:$0xff]   ;;  %v4020_v60 = vld [vmem:[#allocation14 + $0x28] ss:$16 sps:$4 sm:$0xff]   ;;  %v4025_v61 = vld [vmem:[#allocation14 + $0x4] ss:$16 sps:$4 sm:$0xff]  }
  0xa2   :  { %v4028_v62 = vld [vmem:[#allocation14 + $0xc] ss:$16 sps:$4 sm:$0xff]   ;;  %v4023_v63 = vld [vmem:[#allocation14] ss:$16 sps:$4 sm:$0xff]   ;;  %v4026_v0 = vld [vmem:[#allocation14 + $0x8] ss:$16 sps:$4 sm:$0xff]  }
  0xa3   :  { %940 = vmatpush1.bf16.msra.mxu0 %v3993_v43  ;;  %v4031_v1 = vld [vmem:[#allocation14 + $0x1e4] ss:$16 sps:$4 sm:$0xff]   ;;  %v4034_v2 = vld [vmem:[#allocation14 + $0x1ec] ss:$16 sps:$4 sm:$0xff]   ;;  %v4029_v3 = vld [vmem:[#allocation14 + $0x1e0] ss:$16 sps:$4 sm:$0xff]  }
  0xa4   :  { %400 = vmatpush1.bf16.msra.mxu1 %v3971_v13  ;;  %941 = vmatprep.subr.bf16.mxu0 %v4001_v45  ;;  %v4032_v4 = vld [vmem:[#allocation14 + $0x1e8] ss:$16 sps:$4 sm:$0xff]   ;;  %v4037_v5 = vld [vmem:[#allocation14 + $0x1c4] ss:$16 sps:$4 sm:$0xff]   ;;  %v4040_v6 = vld [vmem:[#allocation14 + $0x1cc] ss:$16 sps:$4 sm:$0xff]  }
  0xa5   :  { %401 = vmatprep.subr.bf16.mxu1 %v3972_v14  ;;  %v4035_v7 = vld [vmem:[#allocation14 + $0x1c0] ss:$16 sps:$4 sm:$0xff]   ;;  %v4038_v8 = vld [vmem:[#allocation14 + $0x1c8] ss:$16 sps:$4 sm:$0xff]   ;;  %v4043_v9 = vld [vmem:[#allocation14 + $0x1a4] ss:$16 sps:$4 sm:$0xff]  }
  0xa6   :  { %v4046_v10 = vld [vmem:[#allocation14 + $0x1ac] ss:$16 sps:$4 sm:$0xff]   ;;  %v4041_v11 = vld [vmem:[#allocation14 + $0x1a0] ss:$16 sps:$4 sm:$0xff]   ;;  %v4044_v12 = vld [vmem:[#allocation14 + $0x1a8] ss:$16 sps:$4 sm:$0xff]  }
  0xa7   :  { %942 = vmatpush1.bf16.msra.mxu0 %v3999_v47  ;;  %v4049_v13 = vld [vmem:[#allocation14 + $0x184] ss:$16 sps:$4 sm:$0xff]   ;;  %v4052_v14 = vld [vmem:[#allocation14 + $0x18c] ss:$16 sps:$4 sm:$0xff]   ;;  %v4056_v20 = vld [vmem:[#allocation14 + $0x168] ss:$16 sps:$4 sm:$0xff]  }
  0xa8   :  { %402 = vmatpush1.bf16.msra.mxu1 %v3974_v15  ;;  %943 = vmatprep.subr.bf16.mxu0 %v4007_v49  ;;  %v4047_v15 = vld [vmem:[#allocation14 + $0x180] ss:$16 sps:$4 sm:$0xff]  }
  0xa9   :  { %403 = vmatprep.subr.bf16.mxu1 %v3975_v16  ;;  %v4050_v16 = vld [vmem:[#allocation14 + $0x188] ss:$16 sps:$4 sm:$0xff]  }
  0xab   :  { %944 = vmatpush1.bf16.msra.mxu0 %v4005_v51 }
  0xac   :  { %404 = vmatpush1.bf16.msra.mxu1 %v3977_v17  ;;  %945 = vmatprep.subr.bf16.mxu0 %v4013_v53  ;;  %v4055_v17 = vld [vmem:[#allocation14 + $0x164] ss:$16 sps:$4 sm:$0xff]  }
  0xad   :  { %405 = vmatprep.subr.bf16.mxu1 %v3978_v18  ;;  %v4058_v18 = vld [vmem:[#allocation14 + $0x16c] ss:$16 sps:$4 sm:$0xff]  }
  0xaf   :  { %946 = vmatpush1.bf16.msra.mxu0 %v4011_v55 }
  0xb0   :  { %406 = vmatpush1.bf16.msra.mxu1 %v3980_v19  ;;  %947 = vmatprep.subr.bf16.mxu0 %v4019_v57  ;;  %v4053_v19 = vld [vmem:[#allocation14 + $0x160] ss:$16 sps:$4 sm:$0xff]  }
  0xb1   :  { %978 = vmatprep.subr.bf16.mxu1 %v3986_v34  ;;  %v4530_v34 = vshrl.u32 %v301_v33, 7 }
  0xb3   :  { %948 = vmatpush1.bf16.msra.mxu0 %v4017_v59  ;;  %v4533_v35 = vsub.s32 0, %v4530_v34  ;;  %v4536_v37 = vsub.s32 1, %v4530_v34 }
  0xb4   :  { %949 = vmatprep.subr.bf16.mxu0 %v4025_v61 }
  0xb7   :  { %950 = vmatpush1.bf16.msra.mxu0 %v4023_v63 }
  0xb8   :  { %951 = vmatprep.subr.bf16.mxu0 %v4031_v1 }
  0xbb   :  { %952 = vmatpush2.bf16.msra.mxu0 %v4029_v3 }
  0xbc   :  { %953 = vmatprep.subr.bf16.mxu0 %v4037_v5 }
  0xbf   :  { %954 = vmatpush2.bf16.msra.mxu0 %v4035_v7 }
  0xc0   :  { %955 = vmatprep.subr.bf16.mxu0 %v4043_v9 }
  0xc3   :  { %956 = vmatpush2.bf16.msra.mxu0 %v4041_v11 }
  0xc4   :  { %957 = vmatprep.subr.bf16.mxu0 %v4049_v13 }
  0xc7   :  { %958 = vmatpush2.bf16.msra.mxu0 %v4047_v15 }
  0xc8   :  { %959 = vmatprep.subr.bf16.mxu0 %v4055_v17 }
  0xcb   :  { %960 = vmatpush2.bf16.msra.mxu0 %v4053_v19 }
 0x15a   :  { %v269_v22 = vpop.f32.mrf.mxu0 }
 0x15b   :  { %v270_v23 = vadd.f32 %v3562_v21, %v269_v22  ;;  %v4064_v22 = vld [vmem:[#allocation14 + $0x14c] ss:$16 sps:$4 sm:$0xff]  }
 0x15c   :  { %v3928_v24 = vpop.f32.mrf.mxu0 }
 0x15d   :  { %v278_v26 = vmul.f32 0.2, %v270_v23  ;;  %vm276_vm2 = vcmp.ge.f32.partialorder %v270_v23, 0.0  ;;  %v4062_v24 = vld [vmem:[#allocation14 + $0x148] ss:$16 sps:$4 sm:$0xff]  }
 0x15e   :  { %v272_v25 = vpop.f32.mrf.mxu0 }
 0x15f   :  { %v273_v27 = vadd.f32 %v3562_v21, %v272_v25  ;;  %v280_v30 = vsel %vm276_vm2, %v270_v23, %v278_v26  ;;  %v4061_v21 = vld [vmem:[#allocation14 + $0x144] ss:$16 sps:$4 sm:$0xff]   ;;  %v4059_v23 = vld [vmem:[#allocation14 + $0x140] ss:$16 sps:$4 sm:$0xff]   ;;  %v4070_v26 = vld [vmem:[#allocation14 + $0x12c] ss:$16 sps:$4 sm:$0xff]  }
 0x160   :  { %v3929_v28 = vpop.f32.mrf.mxu0  ;;  %961 = vmatprep.subr.bf16.mxu0 %v4061_v21  ;;  %v4067_v25 = vld [vmem:[#allocation14 + $0x124] ss:$16 sps:$4 sm:$0xff]  }
 0x161   :  { %vm277_vm3 = vcmp.ge.f32.partialorder %v273_v27, 0.0  ;;  %v279_v29 = vmul.f32 0.2, %v273_v27  ;;  %962 = vmatpush2.bf16.msra.mxu0 %v4059_v23  ;;  %v4068_v28 = vld [vmem:[#allocation14 + $0x128] ss:$16 sps:$4 sm:$0xff]  }
 0x162   :  { %963 = vmatprep.subr.bf16.mxu0 %v4067_v25 }
 0x163   :  { %v281_v31 = vsel %vm277_vm3, %v273_v27, %v279_v29  ;;  %v4065_v27 = vld [vmem:[#allocation14 + $0x120] ss:$16 sps:$4 sm:$0xff]   ;;  %v4073_v29 = vld [vmem:[#allocation14 + $0x104] ss:$16 sps:$4 sm:$0xff]  }
 0x164   :  { %v282_v32 = vpack.c.bf16 %v281_v31, %v280_v30  ;;  %v4071_v30 = vld [vmem:[#allocation14 + $0x100] ss:$16 sps:$4 sm:$0xff]   ;;  %v4074_v31 = vld [vmem:[#allocation14 + $0x108] ss:$16 sps:$4 sm:$0xff]  }
 0x165   :  { %964 = vmatpush2.bf16.msra.mxu0 %v4065_v27  ;;  %v435_v27 = vld [vmem:[#allocation13] sm:$0x3] }
 0x166   :  { %424 = vmatmul.mubr.bf16.vlgmr.msra.gmra.mxu1 %v282_v32  ;;  %v4076_v32 = vld [vmem:[#allocation14 + $0x10c] ss:$16 sps:$4 sm:$0xff]   ;;  %965 = vmatprep.subr.bf16.mxu0 %v4073_v29 }
 0x167   :  { %979 = vmatpush1.bf16.msra.mxu1 %v3984_v36  ;;  %v299_v36 = vld [vmem:[#allocation10] sm:$0x3] }
 0x168   :  { %980 = vmatprep.subr.bf16.mxu1 %v3992_v38  ;;  %v304_v39 = vrot.slane %v299_v36, %v4533_v35  ;;  %v308_v41 = vrot.slane %v299_v36, %v4536_v37 }
 0x169   :  { %966 = vmatpush2.bf16.msra.mxu0 %v4071_v30 }
 0x16b   :  { %981 = vmatpush1.bf16.msra.mxu1 %v3990_v40 }
 0x16c   :  { %982 = vmatprep.subr.bf16.mxu1 %v3998_v42 }
 0x16f   :  { %983 = vmatpush1.bf16.msra.mxu1 %v3996_v44 }
 0x170   :  { %984 = vmatprep.subr.bf16.mxu1 %v4004_v46 }
 0x173   :  { %985 = vmatpush1.bf16.msra.mxu1 %v4002_v48 }
 0x174   :  { %986 = vmatprep.subr.bf16.mxu1 %v4010_v50 }
 0x177   :  { %987 = vmatpush1.bf16.msra.mxu1 %v4008_v52 }
 0x178   :  { %988 = vmatprep.subr.bf16.mxu1 %v4016_v54 }
 0x17b   :  { %989 = vmatpush1.bf16.msra.mxu1 %v4014_v56 }
 0x17c   :  { %990 = vmatprep.subr.bf16.mxu1 %v4022_v58 }
 0x17f   :  { %991 = vmatpush1.bf16.msra.mxu1 %v4020_v60 }
 0x180   :  { %992 = vmatprep.subr.bf16.mxu1 %v4028_v62 }
 0x183   :  { %993 = vmatpush1.bf16.msra.mxu1 %v4026_v0 }
 0x184   :  { %994 = vmatprep.subr.bf16.mxu1 %v4034_v2 }
 0x187   :  { %995 = vmatpush2.bf16.msra.mxu1 %v4032_v4 }
 0x188   :  { %996 = vmatprep.subr.bf16.mxu1 %v4040_v6 }
 0x18b   :  { %997 = vmatpush2.bf16.msra.mxu1 %v4038_v8 }
 0x18c   :  { %998 = vmatprep.subr.bf16.mxu1 %v4046_v10 }
 0x18f   :  { %999 = vmatpush2.bf16.msra.mxu1 %v4044_v12 }
 0x190   :  { %1000 = vmatprep.subr.bf16.mxu1 %v4052_v14 }
 0x193   :  { %1001 = vmatpush2.bf16.msra.mxu1 %v4050_v16 }
 0x194   :  { %1002 = vmatprep.subr.bf16.mxu1 %v4058_v18 }
 0x197   :  { %1003 = vmatpush2.bf16.msra.mxu1 %v4056_v20 }
 0x198   :  { %1004 = vmatprep.subr.bf16.mxu1 %v4064_v22 }
 0x19b   :  { %1005 = vmatpush2.bf16.msra.mxu1 %v4062_v24 }
 0x19c   :  { %1006 = vmatprep.subr.bf16.mxu1 %v4070_v26  ;;  %v434_v26 = vld [vmem:[#allocation11] sm:$0x3] }
 0x19d   :  { %v493_v33 = vrot.slane %v434_v26, %v4536_v37 }
 0x19f   :  { %1007 = vmatpush2.bf16.msra.mxu1 %v4068_v28  ;;  %v489_v28 = vrot.slane %v434_v26, %v4533_v35 }
 0x1a0   :  { %1008 = vmatprep.subr.bf16.mxu1 %v4076_v32  ;;  %v504_v32 = vrot.slane %v435_v27, %v4533_v35 }
 0x1a3   :  { %1009 = vmatpush2.bf16.msra.mxu1 %v4074_v31 }
 0x226   :  { %v425_v38 = vpop.f32.mrf.mxu1 }
 0x227   :  { %v426_v43 = vadd.f32 %v425_v38, %v304_v39  ;;  %v508_v38 = vrot.slane %v435_v27, %v4536_v37  ;;  %v1229_v27 = vld [vmem:[#allocation20 + $0xc0] sm:$0xff] }
 0x228   :  { %v427_v40 = vpop.f32.mrf.mxu1 }
 0x229   :  { %v428_v46 = vadd.f32 %v427_v40, %v308_v41 }
 0x22a   :  { %v429_v42 = vpop.f32.mrf.mxu1 }
 0x22b   :  { %v430_v44 = vadd.f32 %v429_v42, %v304_v39 }
 0x22c   :  { %v431_v45 = vpop.f32.mrf.mxu1 }
 0x22d   :  { %v436_v47 = vadd.f32 %v430_v44, %v426_v43  ;;  %v432_v48 = vadd.f32 %v431_v45, %v308_v41 }
 0x22f   :  { %v437_v49 = vrot.slane %v436_v47, 4  ;;  %v443_v50 = vadd.f32 %v432_v48, %v428_v46 }
 0x231   :  { %v438_v51 = vadd.f32 %v437_v49, %v436_v47  ;;  %v444_v52 = vrot.slane %v443_v50, 4 }
 0x233   :  { %v439_v53 = vrot.slane %v438_v51, 2  ;;  %v445_v54 = vadd.f32 %v444_v52, %v443_v50 }
 0x235   :  { %v440_v55 = vadd.f32 %v439_v53, %v438_v51  ;;  %v446_v56 = vrot.slane %v445_v54, 2 }
 0x237   :  { %v441_v57 = vrot.slane %v440_v55, 1  ;;  %v447_v58 = vadd.f32 %v446_v56, %v445_v54 }
 0x239   :  { %v442_v59 = vadd.f32 %v441_v57, %v440_v55  ;;  %v448_v60 = vrot.slane %v447_v58, 1 }
 0x23b   :  { %v451_v61 = vmul.f32 0.0625, %v442_v59  ;;  %v449_v62 = vadd.f32 %v448_v60, %v447_v58  ;;  %v1261_v59 = vld [vmem:[#allocation20 + $0x1c0] sm:$0xff] }
 0x23c   :  { %v1265_v60 = vld [vmem:[#allocation20 + $0x1e0] sm:$0xff] }
 0x23d   :  { %v453_v63 = vsub.f32 %v426_v43, %v451_v61  ;;  %v455_v0 = vsub.f32 %v430_v44, %v451_v61  ;;  %v452_v1 = vmul.f32 0.0625, %v449_v62  ;;  %v1389_v61 = vld [vmem:[#allocation20 + $0x5c0] sm:$0xff]  ;;  %v3704_v62 = vcombine.high %v1261_v59, %v1265_v60 }
 0x23f   :  { %v457_v2 = vmul.f32 %v453_v63, %v453_v63  ;;  %v459_v3 = vmul.f32 %v455_v0, %v455_v0  ;;  %v454_v4 = vsub.f32 %v428_v46, %v452_v1  ;;  %v456_v5 = vsub.f32 %v432_v48, %v452_v1  ;;  %2783 = vmatprep.subr.bf16.mxu0 %v3704_v62  ;;  %v1325_v62 = vld [vmem:[#allocation20 + $0x3c0] sm:$0xff] }
 0x241   :  { %v461_v6 = vadd.f32 %v459_v3, %v457_v2  ;;  %v458_v7 = vmul.f32 %v454_v4, %v454_v4  ;;  %v460_v8 = vmul.f32 %v456_v5, %v456_v5  ;;  %v1253_v3 = vld [vmem:[#allocation20 + $0x180] sm:$0xff] }
 0x243   :  { %v462_v9 = vrot.slane %v461_v6, 4  ;;  %v468_v10 = vadd.f32 %v460_v8, %v458_v7  ;;  %v1385_v7 = vld [vmem:[#allocation20 + $0x5a0] sm:$0xff] }
 0x245   :  { %v463_v11 = vadd.f32 %v462_v9, %v461_v6  ;;  %v469_v12 = vrot.slane %v468_v10, 4 }
 0x247   :  { %v464_v13 = vrot.slane %v463_v11, 2  ;;  %v470_v14 = vadd.f32 %v469_v12, %v468_v10  ;;  %v1249_v12 = vld [vmem:[#allocation20 + $0x160] sm:$0xff] }
 0x249   :  { %v465_v15 = vadd.f32 %v464_v13, %v463_v11  ;;  %v471_v16 = vrot.slane %v470_v14, 2  ;;  %v1245_v11 = vld [vmem:[#allocation20 + $0x140] sm:$0xff] }
 0x24a   :  { %v1373_v13 = vld [vmem:[#allocation20 + $0x540] sm:$0xff] }
 0x24b   :  { %v466_v17 = vrot.slane %v465_v15, 1  ;;  %v472_v18 = vadd.f32 %v471_v16, %v470_v14  ;;  %v3688_v14 = vcombine.high %v1245_v11, %v1249_v12  ;;  %v3687_v16 = vcombine.low %v1245_v11, %v1249_v12 }
 0x24d   :  { %v467_v19 = vadd.f32 %v466_v17, %v465_v15  ;;  %v473_v20 = vrot.slane %v472_v18, 1  ;;  %v1377_v15 = vld [vmem:[#allocation20 + $0x560] sm:$0xff] }
 0x24e   :  { %v3815_v17 = vcombine.low %v1373_v13, %v1377_v15 }
 0x24f   :  { %v475_v21 = vmul.f32 0.0625, %v467_v19  ;;  %v474_v22 = vadd.f32 %v473_v20, %v472_v18  ;;  %v3816_v18 = vcombine.high %v1373_v13, %v1377_v15  ;;  %v1237_v19 = vld [vmem:[#allocation20 + $0x100] sm:$0xff] }
 0x250   :  { %v1241_v20 = vld [vmem:[#allocation20 + $0x120] sm:$0xff] }
 0x251   :  { %v477_v23 = vadd.f32 0.8, %v475_v21  ;;  %v476_v24 = vmul.f32 0.0625, %v474_v22  ;;  %v1365_v21 = vld [vmem:[#allocation20 + $0x500] sm:$0xff]  ;;  %v3680_v22 = vcombine.high %v1237_v19, %v1241_v20 }
 0x252   :  { %v1313_v15 = vld [vmem:[#allocation20 + $0x360] sm:$0xff] }
 0x253   :  { %4077 = vrsqrt.f32 %v477_v23  ;;  %v478_v25 = vadd.f32 0.8, %v476_v24  ;;  %v1369_v23 = vld [vmem:[#allocation20 + $0x520] sm:$0xff]  ;;  %v3679_v24 = vcombine.low %v1237_v19, %v1241_v20 }
 0x254   :  { %v3808_v26 = vcombine.high %v1365_v21, %v1369_v23 }
 0x255   :  { %4079 = vrsqrt.f32 %v478_v25  ;;  %v3807_v25 = vcombine.low %v1365_v21, %v1369_v23  ;;  %v1305_v23 = vld [vmem:[#allocation20 + $0x320] sm:$0xff] }
 0x260   :  { %v4078_v29 = vpop.eup %4077 }
 0x261   :  { %v481_v30 = vmul.f32 %v4078_v29, %v453_v63  ;;  %v483_v31 = vmul.f32 %v4078_v29, %v455_v0  ;;  %v1393_v63 = vld [vmem:[#allocation20 + $0x5e0] sm:$0xff]  ;;  %v3703_v0 = vcombine.low %v1261_v59, %v1265_v60 }
 0x262   :  { %v4080_v36 = vpop.eup %4079  ;;  %v3831_v1 = vcombine.low %v1389_v61, %v1393_v63  ;;  %v3832_v2 = vcombine.high %v1389_v61, %v1393_v63  ;;  %v1357_v29 = vld [vmem:[#allocation20 + $0x4c0] sm:$0xff] }
 0x263   :  { %v496_v39 = vmul.f32 %v489_v28, %v481_v30  ;;  %v498_v40 = vmul.f32 %v489_v28, %v483_v31  ;;  %v482_v41 = vmul.f32 %v4080_v36, %v454_v4  ;;  %v484_v42 = vmul.f32 %v4080_v36, %v456_v5  ;;  %v1257_v4 = vld [vmem:[#allocation20 + $0x1a0] sm:$0xff] }
 0x264   :  { %2826 = vmatprep.subr.bf16.mxu1 %v3832_v2  ;;  %v1381_v5 = vld [vmem:[#allocation20 + $0x580] sm:$0xff]  ;;  %v3696_v6 = vcombine.high %v1253_v3, %v1257_v4  ;;  %v3695_v8 = vcombine.low %v1253_v3, %v1257_v4 }
 0x265   :  { %v511_v43 = vadd.f32 %v504_v32, %v496_v39  ;;  %v513_v44 = vadd.f32 %v504_v32, %v498_v40  ;;  %v497_v45 = vmul.f32 %v493_v33, %v482_v41  ;;  %v499_v46 = vmul.f32 %v493_v33, %v484_v42  ;;  %v1233_v28 = vld [vmem:[#allocation20 + $0xe0] sm:$0xff] }
 0x266   :  { %v3823_v9 = vcombine.low %v1381_v5, %v1385_v7  ;;  %v3824_v10 = vcombine.high %v1381_v5, %v1385_v7  ;;  %v3672_v30 = vcombine.high %v1229_v27, %v1233_v28  ;;  %v1361_v31 = vld [vmem:[#allocation20 + $0x4e0] sm:$0xff]  ;;  %v3671_v32 = vcombine.low %v1229_v27, %v1233_v28 }
 0x267   :  { %v514_v47 = vadd.f32 %v508_v38, %v499_v46  ;;  %v512_v48 = vadd.f32 %v508_v38, %v497_v45  ;;  %vm515_vm4 = vcmp.ge.f32.partialorder %v511_v43, 0.0  ;;  %vm517_vm5 = vcmp.ge.f32.partialorder %v513_v44, 0.0  ;;  %v1221_v38 = vld [vmem:[#allocation20 + $0x80] sm:$0xff] }
 0x268   :  { %v519_v49 = vmul.f32 0.2, %v511_v43  ;;  %v521_v50 = vmul.f32 0.2, %v513_v44  ;;  %v3799_v33 = vcombine.low %v1357_v29, %v1361_v31  ;;  %v3800_v36 = vcombine.high %v1357_v29, %v1361_v31  ;;  %v1225_v39 = vld [vmem:[#allocation20 + $0xa0] sm:$0xff] }
 0x269   :  { %vm516_vm6 = vcmp.ge.f32.partialorder %v512_v48, 0.0  ;;  %vm518_vm7 = vcmp.ge.f32.partialorder %v514_v47, 0.0  ;;  %v520_v51 = vmul.f32 0.2, %v512_v48  ;;  %v522_v52 = vmul.f32 0.2, %v514_v47 }
 0x26a   :  { %v523_v53 = vsel %vm515_vm4, %v511_v43, %v519_v49  ;;  %v525_v54 = vsel %vm517_vm5, %v513_v44, %v521_v50  ;;  %v1349_v40 = vld [vmem:[#allocation20 + $0x480] sm:$0xff]  ;;  %v3664_v41 = vcombine.high %v1221_v38, %v1225_v39  ;;  %v3663_v43 = vcombine.low %v1221_v38, %v1225_v39 }
 0x26b   :  { %v524_v55 = vsel %vm516_vm6, %v512_v48, %v520_v51  ;;  %v526_v56 = vsel %vm518_vm7, %v514_v47, %v522_v52  ;;  %v527_v58 = vpack.c.bf16 %v525_v54, %v523_v53  ;;  %v1353_v42 = vld [vmem:[#allocation20 + $0x4a0] sm:$0xff] }
 0x26c   :  { %v528_v57 = vpack.c.bf16 %v526_v56, %v524_v55  ;;  %v3791_v44 = vcombine.low %v1349_v40, %v1353_v42  ;;  %v3792_v45 = vcombine.high %v1349_v40, %v1353_v42  ;;  %v1213_v46 = vld [vmem:[#allocation20 + $0x40] sm:$0xff] }
 0x26d   :  { %v1217_v47 = vld [vmem:[#allocation20 + $0x60] sm:$0xff] }
 0x26e   :  { %967 = vmatprep.mubr.bf16.mxu0 %v528_v57  ;;  %1010 = vmatprep.mubr.bf16.mxu1 %v528_v57  ;;  %v1341_v48 = vld [vmem:[#allocation20 + $0x440] sm:$0xff]  ;;  %v3656_v49 = vcombine.high %v1213_v46, %v1217_v47  ;;  %v3655_v51 = vcombine.low %v1213_v46, %v1217_v47 }
 0x26f   :  { %968 = vmatmul.mubr.bf16.vlgmr.msra.gmra.mxu0 %v527_v58  ;;  %1011 = vmatmul.mubr.bf16.vlgmr.msra.gmra.mxu1 %v527_v58  ;;  %v1345_v50 = vld [vmem:[#allocation20 + $0x460] sm:$0xff] }
 0x270   :  { %2784 = vmatpush1.bf16.msra.mxu0 %v3703_v0  ;;  %2827 = vmatpush1.bf16.msra.mxu1 %v3831_v1  ;;  %v3783_v52 = vcombine.low %v1341_v48, %v1345_v50  ;;  %v3784_v53 = vcombine.high %v1341_v48, %v1345_v50  ;;  %v1205_v54 = vld [vmem:[#allocation20] sm:$0xff] }
 0x271   :  { %2785 = vmatprep.subr.bf16.mxu0 %v3696_v6  ;;  %2828 = vmatprep.subr.bf16.mxu1 %v3824_v10  ;;  %v1209_v55 = vld [vmem:[#allocation20 + $0x20] sm:$0xff] }
 0x272   :  { %v1333_v56 = vld [vmem:[#allocation20 + $0x400] sm:$0xff]  ;;  %v3648_v57 = vcombine.high %v1205_v54, %v1209_v55  ;;  %v3647_v59 = vcombine.low %v1205_v54, %v1209_v55 }
 0x273   :  { %v1337_v58 = vld [vmem:[#allocation20 + $0x420] sm:$0xff] }
 0x274   :  { %2786 = vmatpush1.bf16.msra.mxu0 %v3695_v8  ;;  %2829 = vmatpush1.bf16.msra.mxu1 %v3823_v9  ;;  %v3775_v60 = vcombine.low %v1333_v56, %v1337_v58  ;;  %v3776_v61 = vcombine.high %v1333_v56, %v1337_v58  ;;  %v1329_v63 = vld [vmem:[#allocation20 + $0x3e0] sm:$0xff] }
 0x275   :  { %2787 = vmatprep.subr.bf16.mxu0 %v3688_v14  ;;  %2830 = vmatprep.subr.bf16.mxu1 %v3816_v18  ;;  %v1453_v0 = vld [vmem:[#allocation20 + $0x7c0] sm:$0xff]  ;;  %v3768_v1 = vcombine.high %v1325_v62, %v1329_v63  ;;  %v3767_v3 = vcombine.low %v1325_v62, %v1329_v63 }
 0x276   :  { %v1457_v2 = vld [vmem:[#allocation20 + $0x7e0] sm:$0xff] }
 0x277   :  { %v3895_v4 = vcombine.low %v1453_v0, %v1457_v2  ;;  %v3896_v5 = vcombine.high %v1453_v0, %v1457_v2  ;;  %v1317_v6 = vld [vmem:[#allocation20 + $0x380] sm:$0xff]  ;;  %v4546_v2 = vld [vmem:[#allocation20 + $0x1e8] sm:$0xff] }
 0x278   :  { %2788 = vmatpush1.bf16.msra.mxu0 %v3687_v16  ;;  %2831 = vmatpush1.bf16.msra.mxu1 %v3815_v17  ;;  %v1321_v7 = vld [vmem:[#allocation20 + $0x3a0] sm:$0xff] }
 0x279   :  { %2789 = vmatprep.subr.bf16.mxu0 %v3680_v22  ;;  %2832 = vmatprep.subr.bf16.mxu1 %v3808_v26  ;;  %v1445_v8 = vld [vmem:[#allocation20 + $0x780] sm:$0xff]  ;;  %v3760_v9 = vcombine.high %v1317_v6, %v1321_v7  ;;  %v3759_v11 = vcombine.low %v1317_v6, %v1321_v7 }
 0x27a   :  { %v1449_v10 = vld [vmem:[#allocation20 + $0x7a0] sm:$0xff] }
 0x27b   :  { %v3887_v12 = vcombine.low %v1445_v8, %v1449_v10  ;;  %v3888_v13 = vcombine.high %v1445_v8, %v1449_v10  ;;  %v1309_v14 = vld [vmem:[#allocation20 + $0x340] sm:$0xff]  ;;  %v593_v10 = vld [vmem:[#allocation16] sm:$0xf] }
 0x27c   :  { %2790 = vmatpush1.bf16.msra.mxu0 %v3679_v24  ;;  %2833 = vmatpush1.bf16.msra.mxu1 %v3807_v25  ;;  %v1437_v16 = vld [vmem:[#allocation20 + $0x740] sm:$0xff]  ;;  %v3752_v17 = vcombine.high %v1309_v14, %v1313_v15  ;;  %v3751_v19 = vcombine.low %v1309_v14, %v1313_v15  ;;  %v598_v14 = vrot.slane %v593_v10, %v4533_v35 }
 0x27d   :  { %2791 = vmatprep.subr.bf16.mxu0 %v3672_v30  ;;  %2834 = vmatprep.subr.bf16.mxu1 %v3800_v36  ;;  %v1441_v18 = vld [vmem:[#allocation20 + $0x760] sm:$0xff] }
 0x27e   :  { %v3879_v20 = vcombine.low %v1437_v16, %v1441_v18  ;;  %v3880_v21 = vcombine.high %v1437_v16, %v1441_v18  ;;  %v1301_v22 = vld [vmem:[#allocation20 + $0x300] sm:$0xff]  ;;  %v602_v16 = vrot.slane %v593_v10, %v4536_v37 }
 0x27f   :  { %v1429_v24 = vld [vmem:[#allocation20 + $0x700] sm:$0xff]  ;;  %v3744_v25 = vcombine.high %v1301_v22, %v1305_v23  ;;  %v3743_v27 = vcombine.low %v1301_v22, %v1305_v23 }
 0x280   :  { %2792 = vmatpush1.bf16.msra.mxu0 %v3671_v32  ;;  %2835 = vmatpush1.bf16.msra.mxu1 %v3799_v33  ;;  %v1433_v26 = vld [vmem:[#allocation20 + $0x720] sm:$0xff] }
 0x281   :  { %2793 = vmatprep.subr.bf16.mxu0 %v3664_v41  ;;  %2836 = vmatprep.subr.bf16.mxu1 %v3792_v45  ;;  %v3871_v28 = vcombine.low %v1429_v24, %v1433_v26  ;;  %v3872_v29 = vcombine.high %v1429_v24, %v1433_v26  ;;  %v1293_v30 = vld [vmem:[#allocation20 + $0x2c0] sm:$0xff] }
 0x282   :  { %v1297_v31 = vld [vmem:[#allocation20 + $0x2e0] sm:$0xff] }
 0x283   :  { %v1421_v32 = vld [vmem:[#allocation20 + $0x6c0] sm:$0xff]  ;;  %v3736_v33 = vcombine.high %v1293_v30, %v1297_v31  ;;  %v3735_v38 = vcombine.low %v1293_v30, %v1297_v31 }
 0x284   :  { %2794 = vmatpush1.bf16.msra.mxu0 %v3663_v43  ;;  %2837 = vmatpush1.bf16.msra.mxu1 %v3791_v44  ;;  %v1425_v36 = vld [vmem:[#allocation20 + $0x6e0] sm:$0xff] }
 0x285   :  { %2795 = vmatprep.subr.bf16.mxu0 %v3656_v49  ;;  %2838 = vmatprep.subr.bf16.mxu1 %v3784_v53  ;;  %v3863_v39 = vcombine.low %v1421_v32, %v1425_v36  ;;  %v3864_v40 = vcombine.high %v1421_v32, %v1425_v36  ;;  %v1285_v41 = vld [vmem:[#allocation20 + $0x280] sm:$0xff] }
 0x286   :  { %v1289_v42 = vld [vmem:[#allocation20 + $0x2a0] sm:$0xff] }
 0x287   :  { %v1413_v43 = vld [vmem:[#allocation20 + $0x680] sm:$0xff]  ;;  %v3728_v44 = vcombine.high %v1285_v41, %v1289_v42  ;;  %v3727_v46 = vcombine.low %v1285_v41, %v1289_v42 }
 0x288   :  { %2796 = vmatpush1.bf16.msra.mxu0 %v3655_v51  ;;  %2839 = vmatpush1.bf16.msra.mxu1 %v3783_v52  ;;  %v1417_v45 = vld [vmem:[#allocation20 + $0x6a0] sm:$0xff] }
 0x289   :  { %2797 = vmatprep.subr.bf16.mxu0 %v3648_v57  ;;  %2840 = vmatprep.subr.bf16.mxu1 %v3776_v61  ;;  %v3855_v47 = vcombine.low %v1413_v43, %v1417_v45  ;;  %v3856_v48 = vcombine.high %v1413_v43, %v1417_v45  ;;  %v1277_v49 = vld [vmem:[#allocation20 + $0x240] sm:$0xff] }
 0x28a   :  { %v1281_v50 = vld [vmem:[#allocation20 + $0x260] sm:$0xff] }
 0x28b   :  { %v1405_v51 = vld [vmem:[#allocation20 + $0x640] sm:$0xff]  ;;  %v3720_v52 = vcombine.high %v1277_v49, %v1281_v50  ;;  %v3719_v54 = vcombine.low %v1277_v49, %v1281_v50 }
 0x28c   :  { %2798 = vmatpush1.bf16.msra.mxu0 %v3647_v59  ;;  %2841 = vmatpush1.bf16.msra.mxu1 %v3775_v60  ;;  %v1409_v53 = vld [vmem:[#allocation20 + $0x660] sm:$0xff] }
 0x28d   :  { %2799 = vmatprep.subr.bf16.mxu0 %v3768_v1  ;;  %2842 = vmatprep.subr.bf16.mxu1 %v3896_v5  ;;  %v3847_v55 = vcombine.low %v1405_v51, %v1409_v53  ;;  %v3848_v56 = vcombine.high %v1405_v51, %v1409_v53  ;;  %v1269_v57 = vld [vmem:[#allocation20 + $0x200] sm:$0xff]  ;;  %v4544_v1 = vld [vmem:[#allocation20 + $0x1c8] sm:$0xff] }
 0x28e   :  { %v1273_v58 = vld [vmem:[#allocation20 + $0x220] sm:$0xff]  ;;  %v4552_v5 = vld [vmem:[#allocation20 + $0x5e8] sm:$0xff]  ;;  %v3705_v6 = vcombine.low %v4544_v1, %v4546_v2 }
 0x28f   :  { %v1397_v59 = vld [vmem:[#allocation20 + $0x600] sm:$0xff]  ;;  %v3711_v60 = vcombine.low %v1269_v57, %v1273_v58  ;;  %v3712_v61 = vcombine.high %v1269_v57, %v1273_v58 }
 0x290   :  { %2800 = vmatpush2.bf16.msra.mxu0 %v3767_v3  ;;  %2843 = vmatpush2.bf16.msra.mxu1 %v3895_v4  ;;  %v1401_v62 = vld [vmem:[#allocation20 + $0x620] sm:$0xff]  ;;  %v4548_v3 = vld [vmem:[#allocation20 + $0x5c8] sm:$0xff]  ;;  %v3706_v4 = vcombine.high %v4544_v1, %v4546_v2 }
 0x291   :  { %2801 = vmatprep.subr.bf16.mxu0 %v3760_v9  ;;  %2844 = vmatprep.subr.bf16.mxu1 %v3888_v13  ;;  %v3839_v63 = vcombine.low %v1397_v59, %v1401_v62  ;;  %v3840_v0 = vcombine.high %v1397_v59, %v1401_v62  ;;  %v3833_v7 = vcombine.low %v4548_v3, %v4552_v5  ;;  %v4561_v9 = vsub.s32 2, %v4530_v34 }
 0x292   :  { %v3834_v8 = vcombine.high %v4548_v3, %v4552_v5 }
 0x293   :  { %v606_v15 = vrot.slane %v593_v10, %v4561_v9 }
 0x294   :  { %2802 = vmatpush2.bf16.msra.mxu0 %v3759_v11  ;;  %2845 = vmatpush2.bf16.msra.mxu1 %v3887_v12  ;;  %v4564_v11 = vsub.s32 3, %v4530_v34 }
 0x295   :  { %2803 = vmatprep.subr.bf16.mxu0 %v3752_v17  ;;  %2846 = vmatprep.subr.bf16.mxu1 %v3880_v21 }
 0x296   :  { %v610_v18 = vrot.slane %v593_v10, %v4564_v11 }
 0x298   :  { %2804 = vmatpush2.bf16.msra.mxu0 %v3751_v19  ;;  %2847 = vmatpush2.bf16.msra.mxu1 %v3879_v20 }
 0x299   :  { %2805 = vmatprep.subr.bf16.mxu0 %v3744_v25  ;;  %2848 = vmatprep.subr.bf16.mxu1 %v3872_v29 }
 0x29c   :  { %2806 = vmatpush2.bf16.msra.mxu0 %v3743_v27  ;;  %2849 = vmatpush2.bf16.msra.mxu1 %v3871_v28 }
 0x29d   :  { %2807 = vmatprep.subr.bf16.mxu0 %v3736_v33  ;;  %2850 = vmatprep.subr.bf16.mxu1 %v3864_v40 }
 0x2a0   :  { %2808 = vmatpush2.bf16.msra.mxu0 %v3735_v38  ;;  %2851 = vmatpush2.bf16.msra.mxu1 %v3863_v39 }
 0x2a1   :  { %2809 = vmatprep.subr.bf16.mxu0 %v3728_v44  ;;  %2852 = vmatprep.subr.bf16.mxu1 %v3856_v48 }
 0x2a4   :  { %2810 = vmatpush2.bf16.msra.mxu0 %v3727_v46  ;;  %2853 = vmatpush2.bf16.msra.mxu1 %v3855_v47 }
 0x2a5   :  { %2811 = vmatprep.subr.bf16.mxu0 %v3720_v52  ;;  %2854 = vmatprep.subr.bf16.mxu1 %v3848_v56 }
 0x2a8   :  { %2812 = vmatpush2.bf16.msra.mxu0 %v3719_v54  ;;  %2855 = vmatpush2.bf16.msra.mxu1 %v3847_v55 }
 0x2a9   :  { %2813 = vmatprep.subr.bf16.mxu0 %v3712_v61  ;;  %2856 = vmatprep.subr.bf16.mxu1 %v3840_v0 }
 0x2ac   :  { %2814 = vmatpush2.bf16.msra.mxu0 %v3711_v60  ;;  %2857 = vmatpush2.bf16.msra.mxu1 %v3839_v63 }
 0x2ad   :  { %2869 = vmatprep.subr.bf16.mxu0 %v3706_v4  ;;  %2912 = vmatprep.subr.bf16.mxu1 %v3834_v8 }
 0x32f   :  { %v969_v12 = vpop.f32.mrf.mxu0  ;;  %v1012_v13 = vpop.f32.mrf.mxu1 }
 0x330   :  { %v970_v22 = vadd.f32 %v969_v12, %v598_v14  ;;  %v1013_v23 = vadd.f32 %v1012_v13, %v606_v15 }
 0x331   :  { %v971_v17 = vpop.f32.mrf.mxu0  ;;  %v1014_v19 = vpop.f32.mrf.mxu1 }
 0x332   :  { %v972_v26 = vadd.f32 %v971_v17, %v602_v16  ;;  %v1015_v27 = vadd.f32 %v1014_v19, %v610_v18 }
 0x333   :  { %v973_v20 = vpop.f32.mrf.mxu0  ;;  %v1016_v21 = vpop.f32.mrf.mxu1 }
 0x334   :  { %v974_v24 = vadd.f32 %v973_v20, %v598_v14  ;;  %v1017_v25 = vadd.f32 %v1016_v21, %v606_v15 }
 0x335   :  { %v975_v28 = vpop.f32.mrf.mxu0  ;;  %v1018_v29 = vpop.f32.mrf.mxu1 }
 0x336   :  { %v1023_v30 = vadd.f32 %v974_v24, %v970_v22  ;;  %v1037_v31 = vadd.f32 %v1017_v25, %v1013_v23  ;;  %v976_v32 = vadd.f32 %v975_v28, %v602_v16  ;;  %v1019_v33 = vadd.f32 %v1018_v29, %v610_v18 }
 0x338   :  { %v1024_v36 = vrot.slane %v1023_v30, 4  ;;  %v1038_v38 = vrot.slane %v1037_v31, 4  ;;  %v1030_v39 = vadd.f32 %v976_v32, %v972_v26  ;;  %v1044_v40 = vadd.f32 %v1019_v33, %v1015_v27 }
 0x33a   :  { %v1025_v41 = vadd.f32 %v1024_v36, %v1023_v30  ;;  %v1039_v42 = vadd.f32 %v1038_v38, %v1037_v31  ;;  %v1031_v43 = vrot.slane %v1030_v39, 4  ;;  %v1045_v44 = vrot.slane %v1044_v40, 4 }
 0x33c   :  { %v1026_v45 = vrot.slane %v1025_v41, 2  ;;  %v1040_v46 = vrot.slane %v1039_v42, 2  ;;  %v1032_v47 = vadd.f32 %v1031_v43, %v1030_v39  ;;  %v1046_v48 = vadd.f32 %v1045_v44, %v1044_v40 }
 0x33e   :  { %v1027_v49 = vadd.f32 %v1026_v45, %v1025_v41  ;;  %v1041_v50 = vadd.f32 %v1040_v46, %v1039_v42  ;;  %v1033_v51 = vrot.slane %v1032_v47, 2  ;;  %v1047_v52 = vrot.slane %v1046_v48, 2 }
 0x340   :  { %v1028_v53 = vrot.slane %v1027_v49, 1  ;;  %v1042_v54 = vrot.slane %v1041_v50, 1  ;;  %v1034_v55 = vadd.f32 %v1033_v51, %v1032_v47  ;;  %v1048_v56 = vadd.f32 %v1047_v52, %v1046_v48 }
 0x342   :  { %v1029_v57 = vadd.f32 %v1028_v53, %v1027_v49  ;;  %v1043_v58 = vadd.f32 %v1042_v54, %v1041_v50  ;;  %v1035_v59 = vrot.slane %v1034_v55, 1  ;;  %v1049_v60 = vrot.slane %v1048_v56, 1 }
 0x344   :  { %v1051_v61 = vmul.f32 0.0625, %v1029_v57  ;;  %v1053_v62 = vmul.f32 0.0625, %v1043_v58  ;;  %v1036_v63 = vadd.f32 %v1035_v59, %v1034_v55  ;;  %v1050_v0 = vadd.f32 %v1049_v60, %v1048_v56 }
 0x346   :  { %v4570_v4 = vsub.f32 %v970_v22, %v1051_v61  ;;  %v4572_v8 = vsub.f32 %v974_v24, %v1051_v61  ;;  %v4574_v10 = vsub.f32 %v1013_v23, %v1053_v62  ;;  %v4576_v12 = vsub.f32 %v1017_v25, %v1053_v62 }
 0x347   :  { %v1052_v13 = vmul.f32 0.0625, %v1036_v63  ;;  %v1054_v14 = vmul.f32 0.0625, %v1050_v0 }
 0x348   :  { %v1063_v15 = vmul.f32 %v4570_v4, %v4570_v4  ;;  %v1067_v16 = vmul.f32 %v4572_v8, %v4572_v8  ;;  %v1065_v17 = vmul.f32 %v4574_v10, %v4574_v10  ;;  %v1069_v18 = vmul.f32 %v4576_v12, %v4576_v12 }
 0x349   :  { %v4586_v19 = vsub.f32 %v972_v26, %v1052_v13  ;;  %v4588_v20 = vsub.f32 %v976_v32, %v1052_v13  ;;  %v4590_v21 = vsub.f32 %v1015_v27, %v1054_v14  ;;  %v4592_v22 = vsub.f32 %v1019_v33, %v1054_v14  ;;  %v1021_v14 = vld [vmem:[#allocation17] sm:$0xf] }
 0x34a   :  { %v1071_v23 = vadd.f32 %v1067_v16, %v1063_v15  ;;  %v1085_v24 = vadd.f32 %v1069_v18, %v1065_v17  ;;  %v1022_v15 = vld [vmem:[#allocation19] sm:$0xf]  ;;  %v1123_v16 = vrot.slane %v1021_v14, %v4533_v35  ;;  %v1131_v18 = vrot.slane %v1021_v14, %v4561_v9 }
 0x34b   :  { %v1064_v25 = vmul.f32 %v4586_v19, %v4586_v19  ;;  %v1068_v28 = vmul.f32 %v4588_v20, %v4588_v20  ;;  %v1066_v29 = vmul.f32 %v4590_v21, %v4590_v21  ;;  %v1070_v26 = vmul.f32 %v4592_v22, %v4592_v22 }
 0x34c   :  { %v1072_v30 = vrot.slane %v1071_v23, 4  ;;  %v1086_v31 = vrot.slane %v1085_v24, 4 }
 0x34d   :  { %v1078_v27 = vadd.f32 %v1068_v28, %v1064_v25  ;;  %v1092_v32 = vadd.f32 %v1070_v26, %v1066_v29  ;;  %v1152_v28 = vrot.slane %v1022_v15, %v4533_v35  ;;  %v1160_v29 = vrot.slane %v1022_v15, %v4561_v9 }
 0x34e   :  { %v1073_v33 = vadd.f32 %v1072_v30, %v1071_v23  ;;  %v1087_v36 = vadd.f32 %v1086_v31, %v1085_v24  ;;  %v1127_v31 = vrot.slane %v1021_v14, %v4536_v37 }
 0x34f   :  { %v1079_v38 = vrot.slane %v1078_v27, 4  ;;  %v1093_v39 = vrot.slane %v1092_v32, 4 }
 0x350   :  { %v1074_v40 = vrot.slane %v1073_v33, 2  ;;  %v1088_v41 = vrot.slane %v1087_v36, 2 }
 0x351   :  { %v1080_v42 = vadd.f32 %v1079_v38, %v1078_v27  ;;  %v1094_v43 = vadd.f32 %v1093_v39, %v1092_v32  ;;  %v1135_v27 = vrot.slane %v1021_v14, %v4564_v11  ;;  %v1156_v38 = vrot.slane %v1022_v15, %v4536_v37  ;;  %v4616_v39 = vld [vmem:[#allocation20 + $0x1a8] sm:$0xff] }
 0x352   :  { %v1075_v44 = vadd.f32 %v1074_v40, %v1073_v33  ;;  %v1089_v45 = vadd.f32 %v1088_v41, %v1087_v36 }
 0x353   :  { %v1081_v46 = vrot.slane %v1080_v42, 2  ;;  %v1095_v47 = vrot.slane %v1094_v43, 2 }
 0x354   :  { %v1076_v48 = vrot.slane %v1075_v44, 1  ;;  %v1090_v49 = vrot.slane %v1089_v45, 1 }
 0x355   :  { %v1082_v50 = vadd.f32 %v1081_v46, %v1080_v42  ;;  %v1096_v51 = vadd.f32 %v1095_v47, %v1094_v43 }
 0x356   :  { %v1077_v52 = vadd.f32 %v1076_v48, %v1075_v44  ;;  %v1091_v53 = vadd.f32 %v1090_v49, %v1089_v45 }
 0x357   :  { %v1083_v54 = vrot.slane %v1082_v50, 1  ;;  %v1097_v55 = vrot.slane %v1096_v51, 1 }
 0x358   :  { %v1099_v56 = vmul.f32 0.0625, %v1077_v52  ;;  %v1101_v57 = vmul.f32 0.0625, %v1091_v53 }
 0x359   :  { %v1084_v58 = vadd.f32 %v1083_v54, %v1082_v50  ;;  %v1098_v59 = vadd.f32 %v1097_v55, %v1096_v51 }
 0x35a   :  { %v1103_v60 = vadd.f32 0.8, %v1099_v56  ;;  %v1105_v61 = vadd.f32 0.8, %v1101_v57 }
 0x35b   :  { %v1100_v62 = vmul.f32 0.0625, %v1084_v58  ;;  %v1102_v63 = vmul.f32 0.0625, %v1098_v59 }
 0x35c   :  { %4081 = vrsqrt.f32 %v1103_v60 }
 0x35d   :  { %4083 = vrsqrt.f32 %v1105_v61  ;;  %v1104_v0 = vadd.f32 0.8, %v1100_v62  ;;  %v1106_v13 = vadd.f32 0.8, %v1102_v63 }
 0x35f   :  { %4085 = vrsqrt.f32 %v1104_v0 }
 0x360   :  { %4087 = vrsqrt.f32 %v1106_v13 }
 0x369   :  { %v4082_v17 = vpop.eup %4081 }
 0x36a   :  { %v4084_v23 = vpop.eup %4083  ;;  %v1111_v24 = vmul.f32 %v4082_v17, %v4570_v4  ;;  %v1115_v25 = vmul.f32 %v4082_v17, %v4572_v8  ;;  %v1164_v4 = vrot.slane %v1022_v15, %v4564_v11  ;;  %v4614_v8 = vld [vmem:[#allocation20 + $0x188] sm:$0xff] }
 0x36b   :  { %v1113_v26 = vmul.f32 %v4084_v23, %v4574_v10  ;;  %v1117_v30 = vmul.f32 %v4084_v23, %v4576_v12  ;;  %v3698_v50 = vcombine.high %v4614_v8, %v4616_v39  ;;  %v1382_v23 = vld [vmem:[#allocation20 + $0x588] sm:$0xff] }
 0x36c   :  { %v4086_v32 = vpop.eup %4085  ;;  %v1140_v33 = vmul.f32 %v1123_v16, %v1111_v24  ;;  %v1144_v36 = vmul.f32 %v1123_v16, %v1115_v25  ;;  %v1386_v24 = vld [vmem:[#allocation20 + $0x5a8] sm:$0xff] }
 0x36d   :  { %v4088_v40 = vpop.eup %4087  ;;  %v1142_v41 = vmul.f32 %v1131_v18, %v1113_v26  ;;  %v1146_v10 = vmul.f32 %v1131_v18, %v1117_v30  ;;  %v1112_v12 = vmul.f32 %v4086_v32, %v4586_v19  ;;  %v1116_v42 = vmul.f32 %v4086_v32, %v4588_v20  ;;  %v1246_v25 = vld [vmem:[#allocation20 + $0x148] sm:$0xff] }
 0x36e   :  { %v1169_v43 = vadd.f32 %v1152_v28, %v1140_v33  ;;  %v1173_v44 = vadd.f32 %v1152_v28, %v1144_v36  ;;  %v1114_v45 = vmul.f32 %v4088_v40, %v4590_v21  ;;  %v1118_v46 = vmul.f32 %v4088_v40, %v4592_v22  ;;  %v1250_v28 = vld [vmem:[#allocation20 + $0x168] sm:$0xff] }
 0x36f   :  { %v1171_v47 = vadd.f32 %v1160_v29, %v1142_v41  ;;  %v1141_v48 = vmul.f32 %v1127_v31, %v1112_v12  ;;  %v1145_v49 = vmul.f32 %v1127_v31, %v1116_v42  ;;  %v1175_v51 = vadd.f32 %v1160_v29, %v1146_v10  ;;  %v1374_v33 = vld [vmem:[#allocation20 + $0x548] sm:$0xff] }
 0x370   :  { %v1143_v52 = vmul.f32 %v1135_v27, %v1114_v45  ;;  %v1147_v53 = vmul.f32 %v1135_v27, %v1118_v46  ;;  %vm1177_vm8 = vcmp.ge.f32.partialorder %v1169_v43, 0.0  ;;  %v1185_v55 = vmul.f32 0.2, %v1169_v43  ;;  %v1378_v36 = vld [vmem:[#allocation20 + $0x568] sm:$0xff] }
 0x371   :  { %v1170_v54 = vadd.f32 %v1156_v38, %v1141_v48  ;;  %v1174_v19 = vadd.f32 %v1156_v38, %v1145_v49  ;;  %v1189_v20 = vmul.f32 0.2, %v1173_v44  ;;  %vm1181_vm9 = vcmp.ge.f32.partialorder %v1173_v44, 0.0  ;;  %v1238_v38 = vld [vmem:[#allocation20 + $0x108] sm:$0xff] }
 0x372   :  { %v1172_v56 = vadd.f32 %v1164_v4, %v1143_v52  ;;  %v1176_v57 = vadd.f32 %v1164_v4, %v1147_v53  ;;  %vm1179_vm10 = vcmp.ge.f32.partialorder %v1171_v47, 0.0  ;;  %v1193_v62 = vsel %vm1177_vm8, %v1169_v43, %v1185_v55  ;;  %v1242_v4 = vld [vmem:[#allocation20 + $0x128] sm:$0xff] }
 0x373   :  { %vm1178_vm11 = vcmp.ge.f32.partialorder %v1170_v54, 0.0  ;;  %vm1182_vm12 = vcmp.ge.f32.partialorder %v1174_v19, 0.0  ;;  %v1186_v21 = vmul.f32 0.2, %v1170_v54  ;;  %v1190_v22 = vmul.f32 0.2, %v1174_v19 }
 0x374   :  { %vm1180_vm13 = vcmp.ge.f32.partialorder %v1172_v56, 0.0  ;;  %vm1184_vm14 = vcmp.ge.f32.partialorder %v1176_v57, 0.0  ;;  %v1188_v58 = vmul.f32 0.2, %v1172_v56  ;;  %v1192_v59 = vmul.f32 0.2, %v1176_v57 }
 0x375   :  { %v1194_v60 = vsel %vm1178_vm11, %v1170_v54, %v1186_v21  ;;  %v1198_v61 = vsel %vm1182_vm12, %v1174_v19, %v1190_v22  ;;  %v1197_v63 = vsel %vm1181_vm9, %v1173_v44, %v1189_v20  ;;  %vm1183_vm15 = vcmp.ge.f32.partialorder %v1175_v51, 0.0  ;;  %v1370_v40 = vld [vmem:[#allocation20 + $0x528] sm:$0xff] }
 0x376   :  { %v4625_v0 = vpack.c.bf16 %v1198_v61, %v1194_v60  ;;  %v1196_v13 = vsel %vm1180_vm13, %v1172_v56, %v1188_v58  ;;  %v1200_v14 = vsel %vm1184_vm14, %v1176_v57, %v1192_v59  ;;  %v4629_v16 = vpack.c.bf16 %v1197_v63, %v1193_v62  ;;  %v1230_v41 = vld [vmem:[#allocation20 + $0xc8] sm:$0xff] }
 0x377   :  { %v4627_v15 = vpack.c.bf16 %v1200_v14, %v1196_v13  ;;  %v1187_v17 = vmul.f32 0.2, %v1171_v47  ;;  %v1191_v18 = vmul.f32 0.2, %v1175_v51  ;;  %v3697_v31 = vcombine.low %v4614_v8, %v4616_v39  ;;  %v1366_v39 = vld [vmem:[#allocation20 + $0x508] sm:$0xff] }
 0x378   :  { %2815 = vmatprep.mubr.bf16.mxu0 %v4625_v0  ;;  %v3826_v27 = vcombine.high %v1382_v23, %v1386_v24  ;;  %v3690_v32 = vcombine.high %v1246_v25, %v1250_v28  ;;  %v3825_v1 = vcombine.low %v1382_v23, %v1386_v24  ;;  %v3689_v2 = vcombine.low %v1246_v25, %v1250_v28  ;;  %v1234_v10 = vld [vmem:[#allocation20 + $0xe8] sm:$0xff] }
 0x379   :  { %2858 = vmatprep.mubr.bf16.mxu1 %v4627_v15  ;;  %2816 = vmatmul.mubr.bf16.vlgmr.msra.gmra.mxu0 %v4629_v16  ;;  %v1195_v29 = vsel %vm1179_vm10, %v1171_v47, %v1187_v17  ;;  %v1199_v26 = vsel %vm1183_vm15, %v1175_v51, %v1191_v18  ;;  %v3682_v8 = vcombine.high %v1238_v38, %v1242_v4  ;;  %v1362_v43 = vld [vmem:[#allocation20 + $0x4e8] sm:$0xff] }
 0x37a   :  { %v4635_v30 = vpack.c.bf16 %v1199_v26, %v1195_v29  ;;  %2870 = vmatpush1.bf16.msra.mxu0 %v3705_v6  ;;  %2901 = vmatprep.mubr.bf16.mxu0 %v4625_v0  ;;  %v3818_v6 = vcombine.high %v1374_v33, %v1378_v36  ;;  %v3817_v12 = vcombine.low %v1374_v33, %v1378_v36  ;;  %v1222_v44 = vld [vmem:[#allocation20 + $0x88] sm:$0xff] }
 0x37b   :  { %2871 = vmatprep.subr.bf16.mxu0 %v3698_v50  ;;  %v3681_v42 = vcombine.low %v1238_v38, %v1242_v4  ;;  %v3810_v3 = vcombine.high %v1366_v39, %v1370_v40  ;;  %v3674_v5 = vcombine.high %v1230_v41, %v1234_v10  ;;  %v1226_v45 = vld [vmem:[#allocation20 + $0xa8] sm:$0xff]  ;;  %v3809_v46 = vcombine.low %v1366_v39, %v1370_v40 }
 0x37c   :  { %2859 = vmatmul.mubr.bf16.vlgmr.msra.gmra.mxu1 %v4635_v30  ;;  %v3673_v47 = vcombine.low %v1230_v41, %v1234_v10  ;;  %v3666_v49 = vcombine.high %v1222_v44, %v1226_v45  ;;  %v1350_v50 = vld [vmem:[#allocation20 + $0x488] sm:$0xff]  ;;  %v3665_v19 = vcombine.low %v1222_v44, %v1226_v45 }
 0x37d   :  { %2913 = vmatpush1.bf16.msra.mxu1 %v3833_v7  ;;  %2944 = vmatprep.mubr.bf16.mxu1 %v4627_v15  ;;  %v1358_v7 = vld [vmem:[#allocation20 + $0x4c8] sm:$0xff] }
 0x37e   :  { %2914 = vmatprep.subr.bf16.mxu1 %v3826_v27  ;;  %2872 = vmatpush1.bf16.msra.mxu0 %v3697_v31  ;;  %v3802_v48 = vcombine.high %v1358_v7, %v1362_v43  ;;  %v1354_v51 = vld [vmem:[#allocation20 + $0x4a8] sm:$0xff]  ;;  %v3801_v54 = vcombine.low %v1358_v7, %v1362_v43 }
 0x37f   :  { %2873 = vmatprep.subr.bf16.mxu0 %v3690_v32  ;;  %v1214_v52 = vld [vmem:[#allocation20 + $0x48] sm:$0xff]  ;;  %v3794_v55 = vcombine.high %v1350_v50, %v1354_v51  ;;  %v3793_v58 = vcombine.low %v1350_v50, %v1354_v51 }
 0x380   :  { %v1218_v53 = vld [vmem:[#allocation20 + $0x68] sm:$0xff] }
 0x381   :  { %2915 = vmatpush1.bf16.msra.mxu1 %v3825_v1  ;;  %v3658_v20 = vcombine.high %v1214_v52, %v1218_v53  ;;  %v1342_v56 = vld [vmem:[#allocation20 + $0x448] sm:$0xff]  ;;  %v3657_v59 = vcombine.low %v1214_v52, %v1218_v53 }
 0x382   :  { %2916 = vmatprep.subr.bf16.mxu1 %v3818_v6  ;;  %2874 = vmatpush1.bf16.msra.mxu0 %v3689_v2  ;;  %v1346_v57 = vld [vmem:[#allocation20 + $0x468] sm:$0xff] }
 0x383   :  { %2875 = vmatprep.subr.bf16.mxu0 %v3682_v8  ;;  %v1206_v21 = vld [vmem:[#allocation20 + $0x8] sm:$0xff]  ;;  %v3786_v60 = vcombine.high %v1342_v56, %v1346_v57  ;;  %v3785_v17 = vcombine.low %v1342_v56, %v1346_v57 }
 0x384   :  { %v1210_v22 = vld [vmem:[#allocation20 + $0x28] sm:$0xff] }
 0x385   :  { %2917 = vmatpush1.bf16.msra.mxu1 %v3817_v12  ;;  %v3650_v61 = vcombine.high %v1206_v21, %v1210_v22  ;;  %v1334_v62 = vld [vmem:[#allocation20 + $0x408] sm:$0xff]  ;;  %v3649_v18 = vcombine.low %v1206_v21, %v1210_v22 }
 0x386   :  { %2918 = vmatprep.subr.bf16.mxu1 %v3810_v3  ;;  %2876 = vmatpush1.bf16.msra.mxu0 %v3681_v42  ;;  %v1338_v63 = vld [vmem:[#allocation20 + $0x428] sm:$0xff] }
 0x387   :  { %2877 = vmatprep.subr.bf16.mxu0 %v3674_v5  ;;  %v1326_v13 = vld [vmem:[#allocation20 + $0x3c8] sm:$0xff]  ;;  %v3778_v23 = vcombine.high %v1334_v62, %v1338_v63  ;;  %v3777_v31 = vcombine.low %v1334_v62, %v1338_v63 }
 0x388   :  { %v1330_v14 = vld [vmem:[#allocation20 + $0x3e8] sm:$0xff] }
 0x389   :  { %2919 = vmatpush1.bf16.msra.mxu1 %v3809_v46  ;;  %v3770_v24 = vcombine.high %v1326_v13, %v1330_v14  ;;  %v1454_v25 = vld [vmem:[#allocation20 + $0x7c8] sm:$0xff]  ;;  %v3769_v27 = vcombine.low %v1326_v13, %v1330_v14 }
 0x38a   :  { %2920 = vmatprep.subr.bf16.mxu1 %v3802_v48  ;;  %2878 = vmatpush1.bf16.msra.mxu0 %v3673_v47  ;;  %v1458_v28 = vld [vmem:[#allocation20 + $0x7e8] sm:$0xff] }
 0x38b   :  { %2879 = vmatprep.subr.bf16.mxu0 %v3666_v49  ;;  %v1318_v29 = vld [vmem:[#allocation20 + $0x388] sm:$0xff]  ;;  %v3898_v32 = vcombine.high %v1454_v25, %v1458_v28  ;;  %v3897_v2 = vcombine.low %v1454_v25, %v1458_v28 }
 0x38c   :  { %v1322_v26 = vld [vmem:[#allocation20 + $0x3a8] sm:$0xff] }
 0x38d   :  { %2921 = vmatpush1.bf16.msra.mxu1 %v3801_v54  ;;  %v3762_v33 = vcombine.high %v1318_v29, %v1322_v26  ;;  %v1446_v36 = vld [vmem:[#allocation20 + $0x788] sm:$0xff]  ;;  %v3761_v6 = vcombine.low %v1318_v29, %v1322_v26  ;;  %v1263_v26 = vld [vmem:[#allocation20 + $0x1d0] sm:$0xff] }
 0x38e   :  { %2922 = vmatprep.subr.bf16.mxu1 %v3794_v55  ;;  %2880 = vmatpush1.bf16.msra.mxu0 %v3665_v19  ;;  %v1450_v38 = vld [vmem:[#allocation20 + $0x7a8] sm:$0xff] }
 0x38f   :  { %2881 = vmatprep.subr.bf16.mxu0 %v3658_v20  ;;  %v1310_v4 = vld [vmem:[#allocation20 + $0x348] sm:$0xff]  ;;  %v3890_v8 = vcombine.high %v1446_v36, %v1450_v38  ;;  %v3889_v42 = vcombine.low %v1446_v36, %v1450_v38  ;;  %v1391_v38 = vld [vmem:[#allocation20 + $0x5d0] sm:$0xff] }
 0x390   :  { %v1314_v1 = vld [vmem:[#allocation20 + $0x368] sm:$0xff] }
 0x391   :  { %2923 = vmatpush1.bf16.msra.mxu1 %v3793_v58  ;;  %v3754_v39 = vcombine.high %v1310_v4, %v1314_v1  ;;  %v1438_v40 = vld [vmem:[#allocation20 + $0x748] sm:$0xff]  ;;  %v3753_v3 = vcombine.low %v1310_v4, %v1314_v1  ;;  %v1395_v4 = vld [vmem:[#allocation20 + $0x5f0] sm:$0xff] }
 0x392   :  { %2924 = vmatprep.subr.bf16.mxu1 %v3786_v60  ;;  %2882 = vmatpush1.bf16.msra.mxu0 %v3657_v59  ;;  %v1442_v41 = vld [vmem:[#allocation20 + $0x768] sm:$0xff]  ;;  %v1255_v1 = vld [vmem:[#allocation20 + $0x190] sm:$0xff] }
 0x393   :  { %2883 = vmatprep.subr.bf16.mxu0 %v3650_v61  ;;  %v1302_v10 = vld [vmem:[#allocation20 + $0x308] sm:$0xff]  ;;  %v3882_v5 = vcombine.high %v1438_v40, %v1442_v41  ;;  %v3881_v47 = vcombine.low %v1438_v40, %v1442_v41  ;;  %v1383_v41 = vld [vmem:[#allocation20 + $0x590] sm:$0xff] }
 0x394   :  { %v1306_v12 = vld [vmem:[#allocation20 + $0x328] sm:$0xff] }
 0x395   :  { %2925 = vmatpush1.bf16.msra.mxu1 %v3785_v17  ;;  %v3746_v7 = vcombine.high %v1302_v10, %v1306_v12  ;;  %v1430_v43 = vld [vmem:[#allocation20 + $0x708] sm:$0xff]  ;;  %v3745_v48 = vcombine.low %v1302_v10, %v1306_v12  ;;  %v1387_v10 = vld [vmem:[#allocation20 + $0x5b0] sm:$0xff] }
 0x396   :  { %2926 = vmatprep.subr.bf16.mxu1 %v3778_v23  ;;  %2884 = vmatpush1.bf16.msra.mxu0 %v3649_v18  ;;  %v1434_v44 = vld [vmem:[#allocation20 + $0x728] sm:$0xff]  ;;  %v1247_v12 = vld [vmem:[#allocation20 + $0x150] sm:$0xff] }
 0x397   :  { %2885 = vmatprep.subr.bf16.mxu0 %v3770_v24  ;;  %v1294_v45 = vld [vmem:[#allocation20 + $0x2c8] sm:$0xff]  ;;  %v3874_v49 = vcombine.high %v1430_v43, %v1434_v44  ;;  %v3873_v19 = vcombine.low %v1430_v43, %v1434_v44  ;;  %v1375_v44 = vld [vmem:[#allocation20 + $0x550] sm:$0xff] }
 0x398   :  { %v1298_v46 = vld [vmem:[#allocation20 + $0x2e8] sm:$0xff] }
 0x399   :  { %2927 = vmatpush1.bf16.msra.mxu1 %v3777_v31  ;;  %v3738_v50 = vcombine.high %v1294_v45, %v1298_v46  ;;  %v1422_v51 = vld [vmem:[#allocation20 + $0x6c8] sm:$0xff]  ;;  %v3737_v55 = vcombine.low %v1294_v45, %v1298_v46  ;;  %v1267_v31 = vld [vmem:[#allocation20 + $0x1f0] sm:$0xff] }
 0x39a   :  { %2928 = vmatprep.subr.bf16.mxu1 %v3898_v32  ;;  %2886 = vmatpush2.bf16.msra.mxu0 %v3769_v27  ;;  %v1426_v52 = vld [vmem:[#allocation20 + $0x6e8] sm:$0xff]  ;;  %v3708_v36 = vcombine.high %v1263_v26, %v1267_v31  ;;  %v1379_v45 = vld [vmem:[#allocation20 + $0x570] sm:$0xff] }
 0x39b   :  { %2887 = vmatprep.subr.bf16.mxu0 %v3762_v33  ;;  %v1286_v53 = vld [vmem:[#allocation20 + $0x288] sm:$0xff]  ;;  %v3866_v20 = vcombine.high %v1422_v51, %v1426_v52  ;;  %v3865_v59 = vcombine.low %v1422_v51, %v1426_v52  ;;  %v1239_v46 = vld [vmem:[#allocation20 + $0x110] sm:$0xff] }
 0x39c   :  { %v1290_v54 = vld [vmem:[#allocation20 + $0x2a8] sm:$0xff]  ;;  %v1367_v52 = vld [vmem:[#allocation20 + $0x510] sm:$0xff] }
 0x39d   :  { %2929 = vmatpush2.bf16.msra.mxu1 %v3897_v2  ;;  %v3730_v56 = vcombine.high %v1286_v53, %v1290_v54  ;;  %v1414_v57 = vld [vmem:[#allocation20 + $0x688] sm:$0xff]  ;;  %v3729_v60 = vcombine.low %v1286_v53, %v1290_v54  ;;  %v1259_v2 = vld [vmem:[#allocation20 + $0x1b0] sm:$0xff] }
 0x39e   :  { %2930 = vmatprep.subr.bf16.mxu1 %v3890_v8  ;;  %2888 = vmatpush2.bf16.msra.mxu0 %v3761_v6  ;;  %v1418_v21 = vld [vmem:[#allocation20 + $0x6a8] sm:$0xff]  ;;  %v3707_v8 = vcombine.low %v1263_v26, %v1267_v31  ;;  %v3700_v40 = vcombine.high %v1255_v1, %v1259_v2  ;;  %v1371_v53 = vld [vmem:[#allocation20 + $0x530] sm:$0xff] }
 0x39f   :  { %2889 = vmatprep.subr.bf16.mxu0 %v3754_v39  ;;  %v1278_v22 = vld [vmem:[#allocation20 + $0x248] sm:$0xff]  ;;  %v3858_v61 = vcombine.high %v1414_v57, %v1418_v21  ;;  %v3857_v18 = vcombine.low %v1414_v57, %v1418_v21  ;;  %v3836_v39 = vcombine.high %v1391_v38, %v1395_v4  ;;  %v1231_v54 = vld [vmem:[#allocation20 + $0xd0] sm:$0xff] }
 0x3a0   :  { %v1282_v58 = vld [vmem:[#allocation20 + $0x268] sm:$0xff]  ;;  %v1359_v21 = vld [vmem:[#allocation20 + $0x4d0] sm:$0xff] }
 0x3a1   :  { %2931 = vmatpush2.bf16.msra.mxu1 %v3889_v42  ;;  %v3722_v62 = vcombine.high %v1278_v22, %v1282_v58  ;;  %v1406_v63 = vld [vmem:[#allocation20 + $0x648] sm:$0xff]  ;;  %v3721_v23 = vcombine.low %v1278_v22, %v1282_v58  ;;  %v1251_v42 = vld [vmem:[#allocation20 + $0x170] sm:$0xff] }
 0x3a2   :  { %2932 = vmatprep.subr.bf16.mxu1 %v3882_v5  ;;  %2890 = vmatpush2.bf16.msra.mxu0 %v3753_v3  ;;  %v1410_v13 = vld [vmem:[#allocation20 + $0x668] sm:$0xff]  ;;  %v3835_v3 = vcombine.low %v1391_v38, %v1395_v4  ;;  %v3699_v5 = vcombine.low %v1255_v1, %v1259_v2  ;;  %v3692_v43 = vcombine.high %v1247_v12, %v1251_v42  ;;  %v1363_v22 = vld [vmem:[#allocation20 + $0x4f0] sm:$0xff] }
 0x3a3   :  { %2891 = vmatprep.subr.bf16.mxu0 %v3746_v7  ;;  %v1270_v14 = vld [vmem:[#allocation20 + $0x208] sm:$0xff]  ;;  %v3850_v24 = vcombine.high %v1406_v63, %v1410_v13  ;;  %v3849_v27 = vcombine.low %v1406_v63, %v1410_v13  ;;  %v3828_v7 = vcombine.high %v1383_v41, %v1387_v10  ;;  %v1223_v58 = vld [vmem:[#allocation20 + $0x90] sm:$0xff] }
 0x3a4   :  { %v1274_v17 = vld [vmem:[#allocation20 + $0x228] sm:$0xff]  ;;  %v1351_v13 = vld [vmem:[#allocation20 + $0x490] sm:$0xff] }
 0x3a5   :  { %2933 = vmatpush2.bf16.msra.mxu1 %v3881_v47  ;;  %v3714_v25 = vcombine.high %v1270_v14, %v1274_v17  ;;  %v1398_v28 = vld [vmem:[#allocation20 + $0x608] sm:$0xff]  ;;  %v3713_v32 = vcombine.low %v1270_v14, %v1274_v17  ;;  %v1243_v47 = vld [vmem:[#allocation20 + $0x130] sm:$0xff] }
 0x3a6   :  { %2934 = vmatprep.subr.bf16.mxu1 %v3874_v49  ;;  %2892 = vmatpush2.bf16.msra.mxu0 %v3745_v48  ;;  %v1402_v29 = vld [vmem:[#allocation20 + $0x628] sm:$0xff]  ;;  %v3827_v48 = vcombine.low %v1383_v41, %v1387_v10  ;;  %v3691_v49 = vcombine.low %v1247_v12, %v1251_v42  ;;  %v3684_v51 = vcombine.high %v1239_v46, %v1243_v47  ;;  %v1355_v14 = vld [vmem:[#allocation20 + $0x4b0] sm:$0xff] }
 0x3a7   :  { %2893 = vmatprep.subr.bf16.mxu0 %v3738_v50  ;;  %v3842_v33 = vcombine.high %v1398_v28, %v1402_v29  ;;  %v3841_v6 = vcombine.low %v1398_v28, %v1402_v29  ;;  %v3820_v50 = vcombine.high %v1375_v44, %v1379_v45  ;;  %v1215_v17 = vld [vmem:[#allocation20 + $0x50] sm:$0xff] }
 0x3a8   :  { %v1343_v29 = vld [vmem:[#allocation20 + $0x450] sm:$0xff] }
 0x3a9   :  { %2935 = vmatpush2.bf16.msra.mxu1 %v3873_v19  ;;  %v1235_v19 = vld [vmem:[#allocation20 + $0xf0] sm:$0xff] }
 0x3aa   :  { %2936 = vmatprep.subr.bf16.mxu1 %v3866_v20  ;;  %2894 = vmatpush2.bf16.msra.mxu0 %v3737_v55  ;;  %v3819_v55 = vcombine.low %v1375_v44, %v1379_v45  ;;  %v3683_v20 = vcombine.low %v1239_v46, %v1243_v47  ;;  %v3676_v57 = vcombine.high %v1231_v54, %v1235_v19  ;;  %v1347_v26 = vld [vmem:[#allocation20 + $0x470] sm:$0xff] }
 0x3ab   :  { %2895 = vmatprep.subr.bf16.mxu0 %v3730_v56  ;;  %v3812_v56 = vcombine.high %v1367_v52, %v1371_v53  ;;  %v1207_v31 = vld [vmem:[#allocation20 + $0x10] sm:$0xff] }
 0x3ac   :  { %v1335_v4 = vld [vmem:[#allocation20 + $0x410] sm:$0xff] }
 0x3ad   :  { %2937 = vmatpush2.bf16.msra.mxu1 %v3865_v59  ;;  %v1227_v59 = vld [vmem:[#allocation20 + $0xb0] sm:$0xff] }
 0x3ae   :  { %2938 = vmatprep.subr.bf16.mxu1 %v3858_v61  ;;  %2896 = vmatpush2.bf16.msra.mxu0 %v3729_v60  ;;  %v3811_v60 = vcombine.low %v1367_v52, %v1371_v53  ;;  %v3675_v61 = vcombine.low %v1231_v54, %v1235_v19  ;;  %v3668_v63 = vcombine.high %v1223_v58, %v1227_v59  ;;  %v1339_v1 = vld [vmem:[#allocation20 + $0x430] sm:$0xff] }
 0x3af   :  { %2897 = vmatprep.subr.bf16.mxu0 %v3722_v62  ;;  %v3804_v62 = vcombine.high %v1359_v21, %v1363_v22  ;;  %v1327_v2 = vld [vmem:[#allocation20 + $0x3d0] sm:$0xff] }
 0x3b0   :  { %v1455_v10 = vld [vmem:[#allocation20 + $0x7d0] sm:$0xff] }
 0x3b1   :  { %2939 = vmatpush2.bf16.msra.mxu1 %v3857_v18  ;;  %v1219_v18 = vld [vmem:[#allocation20 + $0x70] sm:$0xff] }
 0x3b2   :  { %2940 = vmatprep.subr.bf16.mxu1 %v3850_v24  ;;  %2898 = vmatpush2.bf16.msra.mxu0 %v3721_v23  ;;  %v3803_v23 = vcombine.low %v1359_v21, %v1363_v22  ;;  %v3667_v24 = vcombine.low %v1223_v58, %v1227_v59  ;;  %v3660_v28 = vcombine.high %v1215_v17, %v1219_v18  ;;  %v1459_v12 = vld [vmem:[#allocation20 + $0x7f0] sm:$0xff] }
 0x3b3   :  { %2899 = vmatprep.subr.bf16.mxu0 %v3714_v25  ;;  %v3796_v25 = vcombine.high %v1351_v13, %v1355_v14  ;;  %v1319_v42 = vld [vmem:[#allocation20 + $0x390] sm:$0xff] }
 0x3b4   :  { %v1447_v45 = vld [vmem:[#allocation20 + $0x790] sm:$0xff] }
 0x3b5   :  { %2941 = vmatpush2.bf16.msra.mxu1 %v3849_v27  ;;  %v1211_v27 = vld [vmem:[#allocation20 + $0x30] sm:$0xff] }
 0x3b6   :  { %2942 = vmatprep.subr.bf16.mxu1 %v3842_v33  ;;  %2900 = vmatpush2.bf16.msra.mxu0 %v3713_v32  ;;  %v3795_v32 = vcombine.low %v1351_v13, %v1355_v14  ;;  %v3659_v33 = vcombine.low %v1215_v17, %v1219_v18  ;;  %v3652_v38 = vcombine.high %v1207_v31, %v1211_v27  ;;  %v1451_v46 = vld [vmem:[#allocation20 + $0x7b0] sm:$0xff] }
 0x3b7   :  { %2955 = vmatprep.subr.bf16.mxu0 %v3708_v36  ;;  %v3788_v36 = vcombine.high %v1343_v29, %v1347_v26  ;;  %v1311_v47 = vld [vmem:[#allocation20 + $0x350] sm:$0xff] }
 0x3b8   :  { %v1439_v53 = vld [vmem:[#allocation20 + $0x750] sm:$0xff] }
 0x3b9   :  { %2943 = vmatpush2.bf16.msra.mxu1 %v3841_v6  ;;  %2902 = vmatmul.mubr.bf16.vlgmr.msra.gmra.mxu0 %v4629_v16  ;;  %v1331_v6 = vld [vmem:[#allocation20 + $0x3f0] sm:$0xff] }
 0x3ba   :  { %2998 = vmatprep.subr.bf16.mxu1 %v3836_v39  ;;  %2956 = vmatpush1.bf16.msra.mxu0 %v3707_v8  ;;  %v3787_v8 = vcombine.low %v1343_v29, %v1347_v26  ;;  %v3651_v39 = vcombine.low %v1207_v31, %v1211_v27  ;;  %v3772_v41 = vcombine.high %v1327_v2, %v1331_v6  ;;  %v1443_v54 = vld [vmem:[#allocation20 + $0x770] sm:$0xff] }
 0x3bb   :  { %2987 = vmatprep.mubr.bf16.mxu0 %v4625_v0  ;;  %2957 = vmatprep.subr.bf16.mxu0 %v3700_v40  ;;  %v3780_v40 = vcombine.high %v1335_v4, %v1339_v1  ;;  %v1303_v19 = vld [vmem:[#allocation20 + $0x310] sm:$0xff] }
 0x3bc   :  { %2945 = vmatmul.mubr.bf16.vlgmr.msra.gmra.mxu1 %v4635_v30  ;;  %v1431_v22 = vld [vmem:[#allocation20 + $0x710] sm:$0xff] }
 0x3bd   :  { %2999 = vmatpush1.bf16.msra.mxu1 %v3835_v3  ;;  %3030 = vmatprep.mubr.bf16.mxu1 %v4627_v15  ;;  %v1323_v3 = vld [vmem:[#allocation20 + $0x3b0] sm:$0xff] }
 0x3be   :  { %3000 = vmatprep.subr.bf16.mxu1 %v3828_v7  ;;  %2958 = vmatpush1.bf16.msra.mxu0 %v3699_v5  ;;  %v3779_v5 = vcombine.low %v1335_v4, %v1339_v1  ;;  %v3771_v7 = vcombine.low %v1327_v2, %v1331_v6  ;;  %v3764_v44 = vcombine.high %v1319_v42, %v1323_v3  ;;  %v1435_v58 = vld [vmem:[#allocation20 + $0x730] sm:$0xff] }
 0x3bf   :  { %2959 = vmatprep.subr.bf16.mxu0 %v3692_v43  ;;  %v3900_v43 = vcombine.high %v1455_v10, %v1459_v12  ;;  %v1295_v59 = vld [vmem:[#allocation20 + $0x2d0] sm:$0xff] }
 0x3c0   :  { %v1423_v14 = vld [vmem:[#allocation20 + $0x6d0] sm:$0xff] }
 0x3c1   :  { %3001 = vmatpush1.bf16.msra.mxu1 %v3827_v48  ;;  %v1315_v48 = vld [vmem:[#allocation20 + $0x370] sm:$0xff] }
 0x3c2   :  { %3002 = vmatprep.subr.bf16.mxu1 %v3820_v50  ;;  %2960 = vmatpush1.bf16.msra.mxu0 %v3691_v49  ;;  %v3899_v49 = vcombine.low %v1455_v10, %v1459_v12  ;;  %v3763_v50 = vcombine.low %v1319_v42, %v1323_v3  ;;  %v3756_v52 = vcombine.high %v1311_v47, %v1315_v48  ;;  %v1427_v17 = vld [vmem:[#allocation20 + $0x6f0] sm:$0xff]  ;;  %v1264_v3 = vld [vmem:[#allocation20 + $0x1d8] sm:$0xff] }
 0x3c3   :  { %2961 = vmatprep.subr.bf16.mxu0 %v3684_v51  ;;  %v3892_v51 = vcombine.high %v1447_v45, %v1451_v46  ;;  %v1287_v18 = vld [vmem:[#allocation20 + $0x290] sm:$0xff] }
 0x3c4   :  { %v1415_v26 = vld [vmem:[#allocation20 + $0x690] sm:$0xff] }
 0x3c5   :  { %3003 = vmatpush1.bf16.msra.mxu1 %v3819_v55  ;;  %v1307_v55 = vld [vmem:[#allocation20 + $0x330] sm:$0xff] }
 0x3c6   :  { %3004 = vmatprep.subr.bf16.mxu1 %v3812_v56  ;;  %2962 = vmatpush1.bf16.msra.mxu0 %v3683_v20  ;;  %v3891_v20 = vcombine.low %v1447_v45, %v1451_v46  ;;  %v3755_v56 = vcombine.low %v1311_v47, %v1315_v48  ;;  %v3748_v21 = vcombine.high %v1303_v19, %v1307_v55  ;;  %v1419_v31 = vld [vmem:[#allocation20 + $0x6b0] sm:$0xff]  ;;  %v1392_v46 = vld [vmem:[#allocation20 + $0x5d8] sm:$0xff] }
 0x3c7   :  { %2963 = vmatprep.subr.bf16.mxu0 %v3676_v57  ;;  %v3884_v57 = vcombine.high %v1439_v53, %v1443_v54  ;;  %v1279_v27 = vld [vmem:[#allocation20 + $0x250] sm:$0xff]  ;;  %v1396_v47 = vld [vmem:[#allocation20 + $0x5f8] sm:$0xff] }
 0x3c8   :  { %v1407_v1 = vld [vmem:[#allocation20 + $0x650] sm:$0xff]  ;;  %v1256_v48 = vld [vmem:[#allocation20 + $0x198] sm:$0xff] }
 0x3c9   :  { %3005 = vmatpush1.bf16.msra.mxu1 %v3811_v60  ;;  %v1299_v60 = vld [vmem:[#allocation20 + $0x2f0] sm:$0xff] }
 0x3ca   :  { %3006 = vmatprep.subr.bf16.mxu1 %v3804_v62  ;;  %2964 = vmatpush1.bf16.msra.mxu0 %v3675_v61  ;;  %v3883_v61 = vcombine.low %v1439_v53, %v1443_v54  ;;  %v3747_v62 = vcombine.low %v1303_v19, %v1307_v55  ;;  %v3740_v13 = vcombine.high %v1295_v59, %v1299_v60  ;;  %v1411_v2 = vld [vmem:[#allocation20 + $0x670] sm:$0xff]  ;;  %v1384_v54 = vld [vmem:[#allocation20 + $0x598] sm:$0xff] }
 0x3cb   :  { %2965 = vmatprep.subr.bf16.mxu0 %v3668_v63  ;;  %v3876_v63 = vcombine.high %v1431_v22, %v1435_v58  ;;  %v1271_v6 = vld [vmem:[#allocation20 + $0x210] sm:$0xff]  ;;  %v1388_v19 = vld [vmem:[#allocation20 + $0x5b8] sm:$0xff] }
 0x3cc   :  { %v1399_v12 = vld [vmem:[#allocation20 + $0x610] sm:$0xff]  ;;  %v1248_v55 = vld [vmem:[#allocation20 + $0x158] sm:$0xff] }
 0x3cd   :  { %3007 = vmatpush1.bf16.msra.mxu1 %v3803_v23  ;;  %v1291_v23 = vld [vmem:[#allocation20 + $0x2b0] sm:$0xff] }
 0x3ce   :  { %3008 = vmatprep.subr.bf16.mxu1 %v3796_v25  ;;  %2966 = vmatpush1.bf16.msra.mxu0 %v3667_v24  ;;  %v3875_v24 = vcombine.low %v1431_v22, %v1435_v58  ;;  %v3739_v25 = vcombine.low %v1295_v59, %v1299_v60  ;;  %v3732_v29 = vcombine.high %v1287_v18, %v1291_v23  ;;  %v1403_v42 = vld [vmem:[#allocation20 + $0x630] sm:$0xff]  ;;  %v1376_v58 = vld [vmem:[#allocation20 + $0x558] sm:$0xff] }
 0x3cf   :  { %2967 = vmatprep.subr.bf16.mxu0 %v3660_v28  ;;  %v3868_v28 = vcombine.high %v1423_v14, %v1427_v17  ;;  %v1380_v59 = vld [vmem:[#allocation20 + $0x578] sm:$0xff] }
 0x3d0   :  { %v1240_v60 = vld [vmem:[#allocation20 + $0x118] sm:$0xff] }
 0x3d1   :  { %3009 = vmatpush1.bf16.msra.mxu1 %v3795_v32  ;;  %v1283_v32 = vld [vmem:[#allocation20 + $0x270] sm:$0xff] }
 0x3d2   :  { %3010 = vmatprep.subr.bf16.mxu1 %v3788_v36  ;;  %2968 = vmatpush1.bf16.msra.mxu0 %v3659_v33  ;;  %v3867_v33 = vcombine.low %v1423_v14, %v1427_v17  ;;  %v3731_v36 = vcombine.low %v1287_v18, %v1291_v23  ;;  %v3724_v4 = vcombine.high %v1279_v27, %v1283_v32  ;;  %v1368_v17 = vld [vmem:[#allocation20 + $0x518] sm:$0xff] }
 0x3d3   :  { %2969 = vmatprep.subr.bf16.mxu0 %v3652_v38  ;;  %v3860_v38 = vcombine.high %v1415_v26, %v1419_v31  ;;  %v1232_v18 = vld [vmem:[#allocation20 + $0xd8] sm:$0xff] }
 0x3d4   :  { %v1236_v23 = vld [vmem:[#allocation20 + $0xf8] sm:$0xff] }
 0x3d5   :  { %3011 = vmatpush1.bf16.msra.mxu1 %v3787_v8  ;;  %v1275_v8 = vld [vmem:[#allocation20 + $0x230] sm:$0xff] }
 0x3d6   :  { %3012 = vmatprep.subr.bf16.mxu1 %v3780_v40  ;;  %2970 = vmatpush1.bf16.msra.mxu0 %v3651_v39  ;;  %v3859_v39 = vcombine.low %v1415_v26, %v1419_v31  ;;  %v3723_v40 = vcombine.low %v1279_v27, %v1283_v32  ;;  %v3716_v10 = vcombine.high %v1271_v6, %v1275_v8  ;;  %v1364_v26 = vld [vmem:[#allocation20 + $0x4f8] sm:$0xff] }
 0x3d7   :  { %2971 = vmatprep.subr.bf16.mxu0 %v3772_v41  ;;  %v3852_v41 = vcombine.high %v1407_v1, %v1411_v2  ;;  %v1224_v31 = vld [vmem:[#allocation20 + $0x98] sm:$0xff] }
 0x3d8   :  { %v1228_v27 = vld [vmem:[#allocation20 + $0xb8] sm:$0xff] }
 0x3d9   :  { %3013 = vmatpush1.bf16.msra.mxu1 %v3779_v5  ;;  %v1268_v5 = vld [vmem:[#allocation20 + $0x1f8] sm:$0xff] }
 0x3da   :  { %3014 = vmatprep.subr.bf16.mxu1 %v3900_v43  ;;  %2972 = vmatpush2.bf16.msra.mxu0 %v3771_v7  ;;  %v3851_v7 = vcombine.low %v1407_v1, %v1411_v2  ;;  %v3715_v43 = vcombine.low %v1271_v6, %v1275_v8  ;;  %v3710_v45 = vcombine.high %v1264_v3, %v1268_v5  ;;  %v1356_v1 = vld [vmem:[#allocation20 + $0x4b8] sm:$0xff] }
 0x3db   :  { %2973 = vmatprep.subr.bf16.mxu0 %v3764_v44  ;;  %v3844_v44 = vcombine.high %v1399_v12, %v1403_v42  ;;  %v1216_v2 = vld [vmem:[#allocation20 + $0x58] sm:$0xff] }
 0x3dc   :  { %v1220_v6 = vld [vmem:[#allocation20 + $0x78] sm:$0xff] }
 0x3dd   :  { %3015 = vmatpush2.bf16.msra.mxu1 %v3899_v49  ;;  %v1260_v49 = vld [vmem:[#allocation20 + $0x1b8] sm:$0xff] }
 0x3de   :  { %3016 = vmatprep.subr.bf16.mxu1 %v3892_v51  ;;  %2974 = vmatpush2.bf16.msra.mxu0 %v3763_v50  ;;  %v3843_v50 = vcombine.low %v1399_v12, %v1403_v42  ;;  %v3709_v51 = vcombine.low %v1264_v3, %v1268_v5  ;;  %v3702_v53 = vcombine.high %v1256_v48, %v1260_v49  ;;  %v1348_v12 = vld [vmem:[#allocation20 + $0x478] sm:$0xff] }
 0x3df   :  { %2975 = vmatprep.subr.bf16.mxu0 %v3756_v52  ;;  %v3838_v52 = vcombine.high %v1392_v46, %v1396_v47  ;;  %v1208_v42 = vld [vmem:[#allocation20 + $0x18] sm:$0xff] }
 0x3e0   :  { %v1212_v3 = vld [vmem:[#allocation20 + $0x38] sm:$0xff] }
 0x3e1   :  { %3017 = vmatpush2.bf16.msra.mxu1 %v3891_v20  ;;  %v1252_v20 = vld [vmem:[#allocation20 + $0x178] sm:$0xff] }
 0x3e2   :  { %3018 = vmatprep.subr.bf16.mxu1 %v3884_v57  ;;  %2976 = vmatpush2.bf16.msra.mxu0 %v3755_v56  ;;  %v3837_v56 = vcombine.low %v1392_v46, %v1396_v47  ;;  %v3701_v57 = vcombine.low %v1256_v48, %v1260_v49  ;;  %v3694_v22 = vcombine.high %v1248_v55, %v1252_v20  ;;  %v1340_v46 = vld [vmem:[#allocation20 + $0x438] sm:$0xff] }
 0x3e3   :  { %2977 = vmatprep.subr.bf16.mxu0 %v3748_v21  ;;  %v3830_v21 = vcombine.high %v1384_v54, %v1388_v19  ;;  %v1328_v47 = vld [vmem:[#allocation20 + $0x3d8] sm:$0xff] }
 0x3e4   :  { %v1332_v48 = vld [vmem:[#allocation20 + $0x3f8] sm:$0xff] }
 0x3e5   :  { %3019 = vmatpush2.bf16.msra.mxu1 %v3883_v61  ;;  %v1244_v61 = vld [vmem:[#allocation20 + $0x138] sm:$0xff] }
 0x3e6   :  { %3020 = vmatprep.subr.bf16.mxu1 %v3876_v63  ;;  %2978 = vmatpush2.bf16.msra.mxu0 %v3747_v62  ;;  %v3829_v62 = vcombine.low %v1384_v54, %v1388_v19  ;;  %v3693_v63 = vcombine.low %v1248_v55, %v1252_v20  ;;  %v3686_v14 = vcombine.high %v1240_v60, %v1244_v61  ;;  %v1460_v54 = vld [vmem:[#allocation20 + $0x7f8] sm:$0xff] }
 0x3e7   :  { %2979 = vmatprep.subr.bf16.mxu0 %v3740_v13  ;;  %v3822_v13 = vcombine.high %v1376_v58, %v1380_v59  ;;  %v1320_v19 = vld [vmem:[#allocation20 + $0x398] sm:$0xff] }
 0x3e8   :  { %v1324_v55 = vld [vmem:[#allocation20 + $0x3b8] sm:$0xff] }
 0x3e9   :  { %3021 = vmatpush2.bf16.msra.mxu1 %v3875_v24  ;;  %v3821_v24 = vcombine.low %v1376_v58, %v1380_v59  ;;  %v1452_v58 = vld [vmem:[#allocation20 + $0x7b8] sm:$0xff] }
 0x3ea   :  { %3022 = vmatprep.subr.bf16.mxu1 %v3868_v28  ;;  %2980 = vmatpush2.bf16.msra.mxu0 %v3739_v25  ;;  %v3685_v25 = vcombine.low %v1240_v60, %v1244_v61  ;;  %v1312_v59 = vld [vmem:[#allocation20 + $0x358] sm:$0xff] }
 0x3eb   :  { %2981 = vmatprep.subr.bf16.mxu0 %v3732_v29  ;;  %v3678_v29 = vcombine.high %v1232_v18, %v1236_v23  ;;  %v1316_v60 = vld [vmem:[#allocation20 + $0x378] sm:$0xff] }
 0x3ed   :  { %3023 = vmatpush2.bf16.msra.mxu1 %v3867_v33  ;;  %v3677_v33 = vcombine.low %v1232_v18, %v1236_v23  ;;  %v1308_v18 = vld [vmem:[#allocation20 + $0x338] sm:$0xff] }
 0x3ee   :  { %3024 = vmatprep.subr.bf16.mxu1 %v3860_v38  ;;  %2982 = vmatpush2.bf16.msra.mxu0 %v3731_v36  ;;  %v3670_v38 = vcombine.high %v1224_v31, %v1228_v27 }
 0x3ef   :  { %2983 = vmatprep.subr.bf16.mxu0 %v3724_v4  ;;  %v1352_v4 = vld [vmem:[#allocation20 + $0x498] sm:$0xff] }
 0x3f0   :  { %v3797_v5 = vcombine.low %v1352_v4, %v1356_v1 }
 0x3f1   :  { %3025 = vmatpush2.bf16.msra.mxu1 %v3859_v39  ;;  %v3669_v39 = vcombine.low %v1224_v31, %v1228_v27  ;;  %v1300_v31 = vld [vmem:[#allocation20 + $0x2f8] sm:$0xff] }
 0x3f2   :  { %3026 = vmatprep.subr.bf16.mxu1 %v3852_v41  ;;  %2984 = vmatpush2.bf16.msra.mxu0 %v3723_v40  ;;  %v3798_v40 = vcombine.high %v1352_v4, %v1356_v1  ;;  %v3662_v41 = vcombine.high %v1216_v2, %v1220_v6  ;;  %v1428_v4 = vld [vmem:[#allocation20 + $0x6f8] sm:$0xff] }
 0x3f3   :  { %2985 = vmatprep.subr.bf16.mxu0 %v3716_v10  ;;  %v1344_v10 = vld [vmem:[#allocation20 + $0x458] sm:$0xff] }
 0x3f4   :  { %v3789_v49 = vcombine.low %v1344_v10, %v1348_v12  ;;  %v1288_v1 = vld [vmem:[#allocation20 + $0x298] sm:$0xff] }
 0x3f5   :  { %3027 = vmatpush2.bf16.msra.mxu1 %v3851_v7  ;;  %v3661_v7 = vcombine.low %v1216_v2, %v1220_v6  ;;  %v1292_v2 = vld [vmem:[#allocation20 + $0x2b8] sm:$0xff] }
 0x3f6   :  { %3028 = vmatprep.subr.bf16.mxu1 %v3844_v44  ;;  %2986 = vmatpush2.bf16.msra.mxu0 %v3715_v43  ;;  %v3790_v43 = vcombine.high %v1344_v10, %v1348_v12  ;;  %v3654_v44 = vcombine.high %v1208_v42, %v1212_v3  ;;  %v1420_v10 = vld [vmem:[#allocation20 + $0x6b8] sm:$0xff] }
 0x3f7   :  { %3041 = vmatprep.subr.bf16.mxu0 %v3710_v45  ;;  %v1336_v45 = vld [vmem:[#allocation20 + $0x418] sm:$0xff] }
 0x3f8   :  { %v3781_v20 = vcombine.low %v1336_v45, %v1340_v46  ;;  %v1280_v12 = vld [vmem:[#allocation20 + $0x258] sm:$0xff] }
 0x3f9   :  { %3029 = vmatpush2.bf16.msra.mxu1 %v3843_v50  ;;  %2988 = vmatmul.mubr.bf16.vlgmr.msra.gmra.mxu0 %v4629_v16  ;;  %v3653_v50 = vcombine.low %v1208_v42, %v1212_v3  ;;  %v1284_v42 = vld [vmem:[#allocation20 + $0x278] sm:$0xff] }
 0x3fa   :  { %3084 = vmatprep.subr.bf16.mxu1 %v3838_v52  ;;  %3042 = vmatpush1.bf16.msra.mxu0 %v3709_v51  ;;  %v3782_v51 = vcombine.high %v1336_v45, %v1340_v46  ;;  %v3774_v52 = vcombine.high %v1328_v47, %v1332_v48  ;;  %v1412_v45 = vld [vmem:[#allocation20 + $0x678] sm:$0xff] }
 0x3fb   :  { %3073 = vmatprep.mubr.bf16.mxu0 %v4625_v0  ;;  %3043 = vmatprep.subr.bf16.mxu0 %v3702_v53  ;;  %v1372_v0 = vld [vmem:[#allocation20 + $0x538] sm:$0xff] }
 0x3fc   :  { %3031 = vmatmul.mubr.bf16.vlgmr.msra.gmra.mxu1 %v4635_v30  ;;  %v3814_v28 = vcombine.high %v1368_v17, %v1372_v0  ;;  %v3813_v32 = vcombine.low %v1368_v17, %v1372_v0  ;;  %v1456_v53 = vld [vmem:[#allocation20 + $0x7d8] sm:$0xff] }
 0x3fd   :  { %3085 = vmatpush1.bf16.msra.mxu1 %v3837_v56  ;;  %3116 = vmatprep.mubr.bf16.mxu1 %v4627_v15  ;;  %v1360_v15 = vld [vmem:[#allocation20 + $0x4d8] sm:$0xff]  ;;  %v3773_v56 = vcombine.low %v1328_v47, %v1332_v48  ;;  %v3901_v61 = vcombine.low %v1456_v53, %v1460_v54 }
 0x3fe   :  { %3086 = vmatprep.subr.bf16.mxu1 %v3830_v21  ;;  %3044 = vmatpush1.bf16.msra.mxu0 %v3701_v57  ;;  %v3806_v36 = vcombine.high %v1360_v15, %v1364_v26  ;;  %v3805_v8 = vcombine.low %v1360_v15, %v1364_v26  ;;  %v3902_v57 = vcombine.high %v1456_v53, %v1460_v54  ;;  %v1444_v17 = vld [vmem:[#allocation20 + $0x778] sm:$0xff] }
 0x3ff   :  { %3045 = vmatprep.subr.bf16.mxu0 %v3694_v22  ;;  %v3766_v21 = vcombine.high %v1320_v19, %v1324_v55  ;;  %v1448_v22 = vld [vmem:[#allocation20 + $0x798] sm:$0xff] }
 0x400   :  { %v1304_v0 = vld [vmem:[#allocation20 + $0x318] sm:$0xff]  ;;  %v3893_v23 = vcombine.low %v1448_v22, %v1452_v58 }
 0x401   :  { %3087 = vmatpush1.bf16.msra.mxu1 %v3829_v62  ;;  %v3765_v62 = vcombine.low %v1320_v19, %v1324_v55  ;;  %v1436_v15 = vld [vmem:[#allocation20 + $0x738] sm:$0xff] }
 0x402   :  { %3088 = vmatprep.subr.bf16.mxu1 %v3822_v13  ;;  %3046 = vmatpush1.bf16.msra.mxu0 %v3693_v63  ;;  %v3894_v63 = vcombine.high %v1448_v22, %v1452_v58  ;;  %v3758_v13 = vcombine.high %v1312_v59, %v1316_v60  ;;  %v1296_v26 = vld [vmem:[#allocation20 + $0x2d8] sm:$0xff] }
 0x403   :  { %3047 = vmatprep.subr.bf16.mxu0 %v3686_v14  ;;  %v1440_v14 = vld [vmem:[#allocation20 + $0x758] sm:$0xff] }
 0x404   :  { %v3885_v27 = vcombine.low %v1440_v14, %v1444_v17  ;;  %v1272_v46 = vld [vmem:[#allocation20 + $0x218] sm:$0xff] }
 0x405   :  { %3089 = vmatpush1.bf16.msra.mxu1 %v3821_v24  ;;  %v3757_v24 = vcombine.low %v1312_v59, %v1316_v60  ;;  %v1276_v47 = vld [vmem:[#allocation20 + $0x238] sm:$0xff] }
 0x406   :  { %3090 = vmatprep.subr.bf16.mxu1 %v3814_v28  ;;  %3048 = vmatpush1.bf16.msra.mxu0 %v3685_v25  ;;  %v3886_v25 = vcombine.high %v1440_v14, %v1444_v17  ;;  %v3750_v28 = vcombine.high %v1304_v0, %v1308_v18  ;;  %v1404_v53 = vld [vmem:[#allocation20 + $0x638] sm:$0xff]  ;;  %v3717_v19 = vcombine.low %v1272_v46, %v1276_v47 }
 0x407   :  { %3049 = vmatprep.subr.bf16.mxu0 %v3678_v29  ;;  %v1432_v29 = vld [vmem:[#allocation20 + $0x718] sm:$0xff] }
 0x408   :  { %v3877_v6 = vcombine.low %v1432_v29, %v1436_v15 }
 0x409   :  { %3091 = vmatpush1.bf16.msra.mxu1 %v3813_v32  ;;  %v3749_v32 = vcombine.low %v1304_v0, %v1308_v18 }
 0x40a   :  { %3092 = vmatprep.subr.bf16.mxu1 %v3806_v36  ;;  %3050 = vmatpush1.bf16.msra.mxu0 %v3677_v33  ;;  %v3878_v33 = vcombine.high %v1432_v29, %v1436_v15  ;;  %v3742_v36 = vcombine.high %v1296_v26, %v1300_v31 }
 0x40b   :  { %3051 = vmatprep.subr.bf16.mxu0 %v3670_v38  ;;  %v1424_v38 = vld [vmem:[#allocation20 + $0x6d8] sm:$0xff] }
 0x40c   :  { %v3869_v3 = vcombine.low %v1424_v38, %v1428_v4 }
 0x40d   :  { %3093 = vmatpush1.bf16.msra.mxu1 %v3805_v8  ;;  %v3741_v8 = vcombine.low %v1296_v26, %v1300_v31 }
 0x40e   :  { %3094 = vmatprep.subr.bf16.mxu1 %v3798_v40  ;;  %3052 = vmatpush1.bf16.msra.mxu0 %v3669_v39  ;;  %v3870_v39 = vcombine.high %v1424_v38, %v1428_v4  ;;  %v3734_v40 = vcombine.high %v1288_v1, %v1292_v2 }
 0x40f   :  { %3053 = vmatprep.subr.bf16.mxu0 %v3662_v41  ;;  %v1416_v41 = vld [vmem:[#allocation20 + $0x698] sm:$0xff] }
 0x410   :  { %v3861_v48 = vcombine.low %v1416_v41, %v1420_v10 }
 0x411   :  { %3095 = vmatpush1.bf16.msra.mxu1 %v3797_v5  ;;  %v3733_v5 = vcombine.low %v1288_v1, %v1292_v2 }
 0x412   :  { %3096 = vmatprep.subr.bf16.mxu1 %v3790_v43  ;;  %3054 = vmatpush1.bf16.msra.mxu0 %v3661_v7  ;;  %v3862_v7 = vcombine.high %v1416_v41, %v1420_v10  ;;  %v3726_v43 = vcombine.high %v1280_v12, %v1284_v42 }
 0x413   :  { %3055 = vmatprep.subr.bf16.mxu0 %v3654_v44  ;;  %v1408_v44 = vld [vmem:[#allocation20 + $0x658] sm:$0xff] }
 0x414   :  { %v3853_v54 = vcombine.low %v1408_v44, %v1412_v45 }
 0x415   :  { %3097 = vmatpush1.bf16.msra.mxu1 %v3789_v49  ;;  %v3725_v49 = vcombine.low %v1280_v12, %v1284_v42 }
 0x416   :  { %3098 = vmatprep.subr.bf16.mxu1 %v3782_v51  ;;  %3056 = vmatpush1.bf16.msra.mxu0 %v3653_v50  ;;  %v3854_v50 = vcombine.high %v1408_v44, %v1412_v45  ;;  %v3718_v51 = vcombine.high %v1272_v46, %v1276_v47 }
 0x417   :  { %3057 = vmatprep.subr.bf16.mxu0 %v3774_v52  ;;  %v1400_v52 = vld [vmem:[#allocation20 + $0x618] sm:$0xff] }
 0x418   :  { %v3846_v55 = vcombine.high %v1400_v52, %v1404_v53 }
 0x419   :  { %3099 = vmatpush1.bf16.msra.mxu1 %v3781_v20  ;;  %v3845_v20 = vcombine.low %v1400_v52, %v1404_v53 }
 0x41a   :  { %3100 = vmatprep.subr.bf16.mxu1 %v3902_v57  ;;  %3058 = vmatpush2.bf16.msra.mxu0 %v3773_v56  ;;  %v4659_v56 = vld [vmem:[%s4754_s12] sm:$0xff] }
 0x41b   :  { %3059 = vmatprep.subr.bf16.mxu0 %v3766_v21  ;;  %v1466_v57 = vrot.slane %v4659_v56, %v4533_v35  ;;  %v1470_v22 = vrot.slane %v4659_v56, %v4536_v37 }
 0x41d   :  { %3101 = vmatpush2.bf16.msra.mxu1 %v3901_v61 }
 0x41e   :  { %3102 = vmatprep.subr.bf16.mxu1 %v3894_v63  ;;  %3060 = vmatpush2.bf16.msra.mxu0 %v3765_v62 }
 0x41f   :  { %3061 = vmatprep.subr.bf16.mxu0 %v3758_v13 }
 0x421   :  { %3103 = vmatpush2.bf16.msra.mxu1 %v3893_v23 }
 0x422   :  { %3104 = vmatprep.subr.bf16.mxu1 %v3886_v25  ;;  %3062 = vmatpush2.bf16.msra.mxu0 %v3757_v24 }
 0x423   :  { %3063 = vmatprep.subr.bf16.mxu0 %v3750_v28 }
 0x425   :  { %3105 = vmatpush2.bf16.msra.mxu1 %v3885_v27 }
 0x426   :  { %3106 = vmatprep.subr.bf16.mxu1 %v3878_v33  ;;  %3064 = vmatpush2.bf16.msra.mxu0 %v3749_v32 }
 0x427   :  { %3065 = vmatprep.subr.bf16.mxu0 %v3742_v36 }
 0x429   :  { %3107 = vmatpush2.bf16.msra.mxu1 %v3877_v6 }
 0x42a   :  { %3108 = vmatprep.subr.bf16.mxu1 %v3870_v39  ;;  %3066 = vmatpush2.bf16.msra.mxu0 %v3741_v8 }
 0x42b   :  { %3067 = vmatprep.subr.bf16.mxu0 %v3734_v40 }
 0x42d   :  { %3109 = vmatpush2.bf16.msra.mxu1 %v3869_v3 }
 0x42e   :  { %3110 = vmatprep.subr.bf16.mxu1 %v3862_v7  ;;  %3068 = vmatpush2.bf16.msra.mxu0 %v3733_v5 }
 0x42f   :  { %3069 = vmatprep.subr.bf16.mxu0 %v3726_v43 }
 0x431   :  { %3111 = vmatpush2.bf16.msra.mxu1 %v3861_v48 }
 0x432   :  { %3112 = vmatprep.subr.bf16.mxu1 %v3854_v50  ;;  %3070 = vmatpush2.bf16.msra.mxu0 %v3725_v49 }
 0x433   :  { %3071 = vmatprep.subr.bf16.mxu0 %v3718_v51 }
 0x435   :  { %3113 = vmatpush2.bf16.msra.mxu1 %v3853_v54 }
 0x436   :  { %3114 = vmatprep.subr.bf16.mxu1 %v3846_v55  ;;  %3072 = vmatpush2.bf16.msra.mxu0 %v3717_v19 }
 0x439   :  { %3115 = vmatpush2.bf16.msra.mxu1 %v3845_v20  ;;  %3074 = vmatmul.mubr.bf16.vlgmr.msra.gmra.mxu0 %v4629_v16  ;;  %v2817_v21 = vpop.f32.mrf.mxu0 }
 0x43a   :  { %v2818_v60 = vadd.f32 %v2817_v21, %v1466_v57 }
 0x43b   :  { %v2819_v58 = vpop.f32.mrf.mxu0 }
 0x43c   :  { %3117 = vmatmul.mubr.bf16.vlgmr.msra.gmra.mxu1 %v4635_v30  ;;  %v2860_v59 = vpop.f32.mrf.mxu1  ;;  %v2820_v13 = vadd.f32 %v2819_v58, %v1470_v22  ;;  %v4675_v58 = vld [vmem:[%s4756_s14] sm:$0xff] }
 0x43d   :  { %v2821_v61 = vpop.f32.mrf.mxu0  ;;  %v2861_v16 = vadd.f32 %v2860_v59, %v2818_v60 }
 0x43e   :  { %v2862_v62 = vpop.f32.mrf.mxu1  ;;  %v2822_v63 = vadd.f32 %v2821_v61, %v1466_v57 }
 0x43f   :  { %v2823_v14 = vpop.f32.mrf.mxu0  ;;  %v2863_v24 = vadd.f32 %v2862_v62, %v2820_v13 }
 0x440   :  { %v2864_v17 = vpop.f32.mrf.mxu1  ;;  %v2824_v0 = vadd.f32 %v2823_v14, %v1470_v22  ;;  %v4670_v22 = vld [vmem:[%s4755_s13] sm:$0xff]  ;;  %s4404_s13 = smov [#allocation22]  }
 0x441   :  { %v2865_v18 = vadd.f32 %v2864_v17, %v2822_v63  ;;  %v3325_v59 = vrot.slane %v4670_v22, %v4533_v35  ;;  %v3382_v63 = vrot.slane %v4675_v58, %v4533_v35  ;;  %v3329_v13 = vrot.slane %v4670_v22, %v4536_v37  ;;  %s3544_s14 = sshll.u32 %s4404_s13, 4  ;;  %s3545_s14 = int_to_ptr.vmem [resolvable:$true] %s3544_s14 }
 0x442   :  { %v2866_v23 = vpop.f32.mrf.mxu1  ;;  %v1474_v17 = vrot.slane %v4659_v56, %v4561_v9  ;;  %s4345_s24 = scalar_lea.vmem %s3545_s14, 1024  ;;  %p4350_p5 = scmp.lt.s32.totalorder %s3545_s14, %s3545_s14 }
 0x443   :  { %v3129_v25 = vadd.f32 %v2865_v18, %v2861_v16  ;;  %v2867_v28 = vadd.f32 %v2866_v23, %v2824_v0  ;;  %v1478_v0 = vrot.slane %v4659_v56, %v4564_v11  ;;  %p4346_p4 = scmp.ne.s32.totalorder %s3545_s14, %s4345_s24  ;;  %p4351_p6 = scmp.lt.s32.totalorder %s4345_s24, %s4345_s24 }
 0x445   :  { %v3130_v29 = vrot.slane %v3129_v25, 4  ;;  %v3136_v15 = vadd.f32 %v2867_v28, %v2863_v24  ;;  %p4352_p7 = por %p4351_p6, %p4350_p5 }
 0x447   :  { %v3131_v26 = vadd.f32 %v3130_v29, %v3129_v25  ;;  %v3137_v31 = vrot.slane %v3136_v15, 4  ;;  %p4353_p8 = pnand %p4352_p7, %p4346_p4 }
 0x449   :  { %v3132_v30 = vrot.slane %v3131_v26, 2  ;;  %v3138_v27 = vadd.f32 %v3137_v31, %v3136_v15 }
 0x44b   :  { %v3133_v32 = vadd.f32 %v3132_v30, %v3131_v26  ;;  %v3139_v33 = vrot.slane %v3138_v27, 2 }
 0x44d   :  { %v3134_v36 = vrot.slane %v3133_v32, 1  ;;  %v3140_v38 = vadd.f32 %v3139_v33, %v3138_v27 }
 0x44f   :  { %v3135_v4 = vadd.f32 %v3134_v36, %v3133_v32  ;;  %v3141_v1 = vrot.slane %v3140_v38, 1 }
 0x451   :  { %v3185_v2 = vmul.f32 0.0625, %v3135_v4  ;;  %v3142_v6 = vadd.f32 %v3141_v1, %v3140_v38 }
 0x453   :  { %v3193_v8 = vsub.f32 %v2861_v16, %v3185_v2  ;;  %v3201_v39 = vsub.f32 %v2865_v18, %v3185_v2  ;;  %v3186_v40 = vmul.f32 0.0625, %v3142_v6 }
 0x455   :  { %v3209_v41 = vmul.f32 %v3193_v8, %v3193_v8  ;;  %v3217_v10 = vmul.f32 %v3201_v39, %v3201_v39  ;;  %v3194_v12 = vsub.f32 %v2863_v24, %v3186_v40  ;;  %v3202_v42 = vsub.f32 %v2867_v28, %v3186_v40 }
 0x456   :  { %v3386_v28 = vrot.slane %v4675_v58, %v4536_v37 }
 0x457   :  { %v3225_v3 = vadd.f32 %v3217_v10, %v3209_v41  ;;  %v3210_v5 = vmul.f32 %v3194_v12, %v3194_v12  ;;  %v3218_v7 = vmul.f32 %v3202_v42, %v3202_v42 }
 0x459   :  { %v3226_v43 = vrot.slane %v3225_v3, 4  ;;  %v3232_v44 = vadd.f32 %v3218_v7, %v3210_v5 }
 0x45b   :  { %v3227_v45 = vadd.f32 %v3226_v43, %v3225_v3  ;;  %v3233_v46 = vrot.slane %v3232_v44, 4 }
 0x45d   :  { %v3228_v47 = vrot.slane %v3227_v45, 2  ;;  %v3234_v48 = vadd.f32 %v3233_v46, %v3232_v44 }
 0x45f   :  { %v3229_v49 = vadd.f32 %v3228_v47, %v3227_v45  ;;  %v3235_v50 = vrot.slane %v3234_v48, 2 }
 0x461   :  { %v3230_v51 = vrot.slane %v3229_v49, 1  ;;  %v3236_v52 = vadd.f32 %v3235_v50, %v3234_v48 }
 0x463   :  { %v3231_v53 = vadd.f32 %v3230_v51, %v3229_v49  ;;  %v3237_v54 = vrot.slane %v3236_v52, 1 }
 0x465   :  { %v3281_v19 = vmul.f32 0.0625, %v3231_v53  ;;  %v3238_v55 = vadd.f32 %v3237_v54, %v3236_v52 }
 0x467   :  { %v3289_v20 = vadd.f32 0.8, %v3281_v19  ;;  %v3282_v57 = vmul.f32 0.0625, %v3238_v55 }
 0x469   :  { %4089 = vrsqrt.f32 %v3289_v20  ;;  %v3290_v21 = vadd.f32 0.8, %v3282_v57 }
 0x46b   :  { %4091 = vrsqrt.f32 %v3290_v21 }
 0x476   :  { %v4090_v60 = vpop.eup %4089 }
 0x477   :  { %v3305_v61 = vmul.f32 %v4090_v60, %v3193_v8  ;;  %v3313_v62 = vmul.f32 %v4090_v60, %v3201_v39 }
 0x478   :  { %v4092_v14 = vpop.eup %4091 }
 0x479   :  { %v3362_v16 = vmul.f32 %v3325_v59, %v3305_v61  ;;  %v3370_v18 = vmul.f32 %v3325_v59, %v3313_v62  ;;  %v3306_v23 = vmul.f32 %v4092_v14, %v3194_v12  ;;  %v3314_v24 = vmul.f32 %v4092_v14, %v3202_v42  ;;  %v2903_v25 = vpop.f32.mrf.mxu0 }
 0x47a   :  { %v2904_v32 = vadd.f32 %v2903_v25, %v1474_v17 }
 0x47b   :  { %v3419_v29 = vadd.f32 %v3382_v63, %v3362_v16  ;;  %v3427_v35 = vadd.f32 %v3382_v63, %v3370_v18  ;;  %v3363_v15 = vmul.f32 %v3329_v13, %v3306_v23  ;;  %v3371_v26 = vmul.f32 %v3329_v13, %v3314_v24  ;;  %v2905_v31 = vpop.f32.mrf.mxu0 }
 0x47c   :  { %v2946_v30 = vpop.f32.mrf.mxu1  ;;  %v2906_v33 = vadd.f32 %v2905_v31, %v1478_v0 }
 0x47d   :  { %vm3435_vm0 = vcmp.ge.f32.partialorder %v3419_v29, 0.0  ;;  %v3451_v27 = vmul.f32 0.2, %v3419_v29  ;;  %v2907_v36 = vpop.f32.mrf.mxu0  ;;  %v3459_v38 = vmul.f32 0.2, %v3427_v35  ;;  %v3420_v4 = vadd.f32 %v3386_v28, %v3363_v15 }
 0x47e   :  { %v3428_v1 = vadd.f32 %v3386_v28, %v3371_v26  ;;  %v2948_v2 = vpop.f32.mrf.mxu1  ;;  %v2908_v6 = vadd.f32 %v2907_v36, %v1474_v17  ;;  %vm3443_vm1 = vcmp.ge.f32.partialorder %v3427_v35, 0.0  ;;  %v2947_v10 = vadd.f32 %v2946_v30, %v2904_v32 }
 0x47f   :  { %v2909_v8 = vpop.f32.mrf.mxu0  ;;  %vm3436_vm2 = vcmp.ge.f32.partialorder %v3420_v4, 0.0  ;;  %v3452_v37 = vmul.f32 0.2, %v3420_v4  ;;  %v3467_v41 = vsel %vm3435_vm0, %v3419_v29, %v3451_v27  ;;  %v3475_v3 = vsel %vm3443_vm1, %v3427_v35, %v3459_v38 }
 0x480   :  { %vm3444_vm3 = vcmp.ge.f32.partialorder %v3428_v1, 0.0  ;;  %v3460_v39 = vmul.f32 0.2, %v3428_v1  ;;  %v2950_v40 = vpop.f32.mrf.mxu1  ;;  %v2910_v42 = vadd.f32 %v2909_v8, %v1478_v0  ;;  %v2949_v43 = vadd.f32 %v2948_v2, %v2906_v33 }
 0x481   :  { %v2951_v12 = vadd.f32 %v2950_v40, %v2908_v6  ;;  %v3468_v5 = vsel %vm3436_vm2, %v3420_v4, %v3452_v37  ;;  %v4691_v8 = vsub.s32 4, %v4530_v34  ;;  %v4694_v37 = vsub.s32 5, %v4530_v34 }
 0x482   :  { %v3476_v7 = vsel %vm3444_vm3, %v3428_v1, %v3460_v39  ;;  %v2952_v44 = vpop.f32.mrf.mxu1  ;;  %v3911_v45 = vpack.c.bf16 %v3468_v5, %v3467_v41  ;;  %v3333_v39 = vrot.slane %v4670_v22, %v4561_v9 }
 0x483   :  { %v3915_v46 = vpack.c.bf16 %v3476_v7, %v3475_v3  ;;  %v3143_v47 = vadd.f32 %v2951_v12, %v2947_v10  ;;  %v2953_v48 = vadd.f32 %v2952_v44, %v2910_v42  ;;  %v3337_v42 = vrot.slane %v4670_v22, %v4564_v11 }
 0x484   :  { %3531 = vst [vmem:[#allocation22] sm:$0xff] %v3911_v45  ;;  %v1482_v5 = vrot.slane %v4659_v56, %v4691_v8  ;;  %v1486_v7 = vrot.slane %v4659_v56, %v4694_v37 }
 0x485   :  { %3535 = vst [vmem:[#allocation22 + $0x20] sm:$0xff] %v3915_v46  ;;  %v3144_v49 = vrot.slane %v3143_v47, 4  ;;  %v3150_v50 = vadd.f32 %v2953_v48, %v2949_v43 }
 0x487   :  { %v3145_v51 = vadd.f32 %v3144_v49, %v3143_v47  ;;  %v3151_v52 = vrot.slane %v3150_v50, 4 }
 0x489   :  { %v3146_v53 = vrot.slane %v3145_v51, 2  ;;  %v3152_v54 = vadd.f32 %v3151_v52, %v3150_v50 }
 0x48b   :  { %v3147_v19 = vadd.f32 %v3146_v53, %v3145_v51  ;;  %v3153_v55 = vrot.slane %v3152_v54, 2 }
 0x48d   :  { %v3148_v20 = vrot.slane %v3147_v19, 1  ;;  %v3154_v57 = vadd.f32 %v3153_v55, %v3152_v54 }
 0x48f   :  { %v3149_v21 = vadd.f32 %v3148_v20, %v3147_v19  ;;  %v3155_v59 = vrot.slane %v3154_v57, 1 }
 0x491   :  { %v3187_v60 = vmul.f32 0.0625, %v3149_v21  ;;  %v3156_v61 = vadd.f32 %v3155_v59, %v3154_v57 }
 0x493   :  { %v3195_v62 = vsub.f32 %v2947_v10, %v3187_v60  ;;  %v3203_v63 = vsub.f32 %v2951_v12, %v3187_v60  ;;  %v3188_v13 = vmul.f32 0.0625, %v3156_v61  ;;  %v3390_v12 = vrot.slane %v4675_v58, %v4561_v9 }
 0x495   :  { %v3211_v14 = vmul.f32 %v3195_v62, %v3195_v62  ;;  %v3219_v17 = vmul.f32 %v3203_v63, %v3203_v63  ;;  %v3196_v0 = vsub.f32 %v2949_v43, %v3188_v13  ;;  %v3204_v16 = vsub.f32 %v2953_v48, %v3188_v13 }
 0x496   :  { %v3394_v48 = vrot.slane %v4675_v58, %v4564_v11 }
 0x497   :  { %v3239_v18 = vadd.f32 %v3219_v17, %v3211_v14  ;;  %v3212_v23 = vmul.f32 %v3196_v0, %v3196_v0  ;;  %v3220_v24 = vmul.f32 %v3204_v16, %v3204_v16 }
 0x499   :  { %v3240_v25 = vrot.slane %v3239_v18, 4  ;;  %v3246_v28 = vadd.f32 %v3220_v24, %v3212_v23 }
 0x49b   :  { %v3241_v29 = vadd.f32 %v3240_v25, %v3239_v18  ;;  %v3247_v35 = vrot.slane %v3246_v28, 4 }
 0x49d   :  { %v3242_v15 = vrot.slane %v3241_v29, 2  ;;  %v3248_v26 = vadd.f32 %v3247_v35, %v3246_v28 }
 0x49f   :  { %v3243_v31 = vadd.f32 %v3242_v15, %v3241_v29  ;;  %v3249_v30 = vrot.slane %v3248_v26, 2 }
 0x4a1   :  { %v3244_v27 = vrot.slane %v3243_v31, 1  ;;  %v3250_v32 = vadd.f32 %v3249_v30, %v3248_v26 }
 0x4a3   :  { %v3245_v33 = vadd.f32 %v3244_v27, %v3243_v31  ;;  %v3251_v36 = vrot.slane %v3250_v32, 1 }
 0x4a5   :  { %v3283_v38 = vmul.f32 0.0625, %v3245_v33  ;;  %v3252_v4 = vadd.f32 %v3251_v36, %v3250_v32 }
 0x4a7   :  { %v3291_v1 = vadd.f32 0.8, %v3283_v38  ;;  %v3284_v2 = vmul.f32 0.0625, %v3252_v4 }
 0x4a9   :  { %4093 = vrsqrt.f32 %v3291_v1  ;;  %v3292_v6 = vadd.f32 0.8, %v3284_v2 }
 0x4ab   :  { %4095 = vrsqrt.f32 %v3292_v6 }
 0x4b6   :  { %v4094_v40 = vpop.eup %4093 }
 0x4b7   :  { %v3307_v41 = vmul.f32 %v4094_v40, %v3195_v62  ;;  %v3315_v10 = vmul.f32 %v4094_v40, %v3203_v63 }
 0x4b8   :  { %v4096_v3 = vpop.eup %4095 }
 0x4b9   :  { %v3364_v43 = vmul.f32 %v3333_v39, %v3307_v41  ;;  %v3372_v44 = vmul.f32 %v3333_v39, %v3315_v10  ;;  %v3308_v45 = vmul.f32 %v4096_v3, %v3196_v0  ;;  %v3316_v46 = vmul.f32 %v4096_v3, %v3204_v16  ;;  %v2989_v47 = vpop.f32.mrf.mxu0 }
 0x4ba   :  { %v2990_v19 = vadd.f32 %v2989_v47, %v1482_v5 }
 0x4bb   :  { %v3421_v49 = vadd.f32 %v3390_v12, %v3364_v43  ;;  %v3429_v9 = vadd.f32 %v3390_v12, %v3372_v44  ;;  %v3365_v50 = vmul.f32 %v3337_v42, %v3308_v45  ;;  %v3373_v51 = vmul.f32 %v3337_v42, %v3316_v46  ;;  %v2991_v52 = vpop.f32.mrf.mxu0 }
 0x4bc   :  { %v3032_v53 = vpop.f32.mrf.mxu1  ;;  %v2992_v55 = vadd.f32 %v2991_v52, %v1486_v7 }
 0x4bd   :  { %vm3437_vm4 = vcmp.ge.f32.partialorder %v3421_v49, 0.0  ;;  %v3453_v54 = vmul.f32 0.2, %v3421_v49  ;;  %v2993_v20 = vpop.f32.mrf.mxu0  ;;  %v3461_v57 = vmul.f32 0.2, %v3429_v9  ;;  %v3422_v21 = vadd.f32 %v3394_v48, %v3365_v50 }
 0x4be   :  { %v3430_v59 = vadd.f32 %v3394_v48, %v3373_v51  ;;  %v3034_v60 = vpop.f32.mrf.mxu1  ;;  %v2994_v61 = vadd.f32 %v2993_v20, %v1482_v5  ;;  %vm3445_vm5 = vcmp.ge.f32.partialorder %v3429_v9, 0.0  ;;  %v3033_v17 = vadd.f32 %v3032_v53, %v2990_v19 }
 0x4bf   :  { %v2995_v62 = vpop.f32.mrf.mxu0  ;;  %vm3438_vm6 = vcmp.ge.f32.partialorder %v3422_v21, 0.0  ;;  %v3454_v11 = vmul.f32 0.2, %v3422_v21  ;;  %v3469_v14 = vsel %vm3437_vm4, %v3421_v49, %v3453_v54  ;;  %v3477_v18 = vsel %vm3445_vm5, %v3429_v9, %v3461_v57 }
 0x4c0   :  { %vm3446_vm7 = vcmp.ge.f32.partialorder %v3430_v59, 0.0  ;;  %v3462_v63 = vmul.f32 0.2, %v3430_v59  ;;  %v3036_v13 = vpop.f32.mrf.mxu1  ;;  %v2996_v16 = vadd.f32 %v2995_v62, %v1486_v7  ;;  %v3035_v25 = vadd.f32 %v3034_v60, %v2992_v55 }
 0x4c1   :  { %v3037_v0 = vadd.f32 %v3036_v13, %v2994_v61  ;;  %v3470_v23 = vsel %vm3438_vm6, %v3422_v21, %v3454_v11  ;;  %v4710_v62 = vsub.s32 6, %v4530_v34  ;;  %v4713_v11 = vsub.s32 7, %v4530_v34 }
 0x4c2   :  { %v3478_v24 = vsel %vm3446_vm7, %v3430_v59, %v3462_v63  ;;  %v3038_v28 = vpop.f32.mrf.mxu1  ;;  %v3912_v29 = vpack.c.bf16 %v3470_v23, %v3469_v14  ;;  %v3341_v63 = vrot.slane %v4670_v22, %v4691_v8 }
 0x4c3   :  { %v3916_v35 = vpack.c.bf16 %v3478_v24, %v3477_v18  ;;  %v3157_v15 = vadd.f32 %v3037_v0, %v3033_v17  ;;  %v3039_v26 = vadd.f32 %v3038_v28, %v2996_v16  ;;  %v3345_v16 = vrot.slane %v4670_v22, %v4694_v37 }
 0x4c4   :  { %3532 = vst [vmem:[#allocation22 + $0x8] sm:$0xff] %v3912_v29  ;;  %v1490_v23 = vrot.slane %v4659_v56, %v4710_v62  ;;  %v1494_v34 = vrot.slane %v4659_v56, %v4713_v11 }
 0x4c5   :  { %3536 = vst [vmem:[#allocation22 + $0x28] sm:$0xff] %v3916_v35  ;;  %v3158_v31 = vrot.slane %v3157_v15, 4  ;;  %v3164_v30 = vadd.f32 %v3039_v26, %v3035_v25 }
 0x4c7   :  { %v3159_v27 = vadd.f32 %v3158_v31, %v3157_v15  ;;  %v3165_v32 = vrot.slane %v3164_v30, 4  ;;  %v3402_v15 = vrot.slane %v4675_v58, %v4694_v37 }
 0x4c9   :  { %v3160_v33 = vrot.slane %v3159_v27, 2  ;;  %v3166_v36 = vadd.f32 %v3165_v32, %v3164_v30 }
 0x4cb   :  { %v3161_v38 = vadd.f32 %v3160_v33, %v3159_v27  ;;  %v3167_v4 = vrot.slane %v3166_v36, 2 }
 0x4cd   :  { %v3162_v1 = vrot.slane %v3161_v38, 1  ;;  %v3168_v2 = vadd.f32 %v3167_v4, %v3166_v36 }
 0x4cf   :  { %v3163_v6 = vadd.f32 %v3162_v1, %v3161_v38  ;;  %v3169_v39 = vrot.slane %v3168_v2, 1 }
 0x4d1   :  { %v3189_v40 = vmul.f32 0.0625, %v3163_v6  ;;  %v3170_v41 = vadd.f32 %v3169_v39, %v3168_v2 }
 0x4d3   :  { %v3197_v10 = vsub.f32 %v3033_v17, %v3189_v40  ;;  %v3205_v12 = vsub.f32 %v3037_v0, %v3189_v40  ;;  %v3190_v42 = vmul.f32 0.0625, %v3170_v41  ;;  %v3398_v0 = vrot.slane %v4675_v58, %v4691_v8 }
 0x4d5   :  { %v3213_v3 = vmul.f32 %v3197_v10, %v3197_v10  ;;  %v3221_v5 = vmul.f32 %v3205_v12, %v3205_v12  ;;  %v3198_v7 = vsub.f32 %v3035_v25, %v3190_v42  ;;  %v3206_v43 = vsub.f32 %v3039_v26, %v3190_v42 }
 0x4d7   :  { %v3253_v44 = vadd.f32 %v3221_v5, %v3213_v3  ;;  %v3214_v45 = vmul.f32 %v3198_v7, %v3198_v7  ;;  %v3222_v46 = vmul.f32 %v3206_v43, %v3206_v43 }
 0x4d9   :  { %v3254_v47 = vrot.slane %v3253_v44, 4  ;;  %v3260_v48 = vadd.f32 %v3222_v46, %v3214_v45 }
 0x4db   :  { %v3255_v49 = vadd.f32 %v3254_v47, %v3253_v44  ;;  %v3261_v9 = vrot.slane %v3260_v48, 4 }
 0x4dd   :  { %v3256_v50 = vrot.slane %v3255_v49, 2  ;;  %v3262_v51 = vadd.f32 %v3261_v9, %v3260_v48 }
 0x4df   :  { %v3257_v52 = vadd.f32 %v3256_v50, %v3255_v49  ;;  %v3263_v53 = vrot.slane %v3262_v51, 2 }
 0x4e1   :  { %v3258_v54 = vrot.slane %v3257_v52, 1  ;;  %v3264_v19 = vadd.f32 %v3263_v53, %v3262_v51 }
 0x4e3   :  { %v3259_v55 = vadd.f32 %v3258_v54, %v3257_v52  ;;  %v3265_v20 = vrot.slane %v3264_v19, 1 }
 0x4e5   :  { %v3285_v57 = vmul.f32 0.0625, %v3259_v55  ;;  %v3266_v21 = vadd.f32 %v3265_v20, %v3264_v19 }
 0x4e7   :  { %v3293_v59 = vadd.f32 0.8, %v3285_v57  ;;  %v3286_v60 = vmul.f32 0.0625, %v3266_v21 }
 0x4e9   :  { %4097 = vrsqrt.f32 %v3293_v59  ;;  %v3294_v61 = vadd.f32 0.8, %v3286_v60 }
 0x4eb   :  { %4099 = vrsqrt.f32 %v3294_v61 }
 0x4f6   :  { %v4098_v13 = vpop.eup %4097 }
 0x4f7   :  { %v3309_v14 = vmul.f32 %v4098_v13, %v3197_v10  ;;  %v3317_v17 = vmul.f32 %v4098_v13, %v3205_v12 }
 0x4f8   :  { %v4100_v18 = vpop.eup %4099 }
 0x4f9   :  { %v3366_v24 = vmul.f32 %v3341_v63, %v3309_v14  ;;  %v3374_v25 = vmul.f32 %v3341_v63, %v3317_v17  ;;  %v3310_v28 = vmul.f32 %v4100_v18, %v3198_v7  ;;  %v3318_v29 = vmul.f32 %v4100_v18, %v3206_v43  ;;  %v3075_v35 = vpop.f32.mrf.mxu0 }
 0x4fa   :  { %v3076_v36 = vadd.f32 %v3075_v35, %v1490_v23 }
 0x4fb   :  { %v3423_v26 = vadd.f32 %v3398_v0, %v3366_v24  ;;  %v3431_v8 = vadd.f32 %v3398_v0, %v3374_v25  ;;  %v3367_v31 = vmul.f32 %v3345_v16, %v3310_v28  ;;  %v3375_v30 = vmul.f32 %v3345_v16, %v3318_v29  ;;  %v3077_v27 = vpop.f32.mrf.mxu0 }
 0x4fc   :  { %v3118_v32 = vpop.f32.mrf.mxu1  ;;  %v3078_v38 = vadd.f32 %v3077_v27, %v1494_v34 }
 0x4fd   :  { %vm3439_vm8 = vcmp.ge.f32.partialorder %v3423_v26, 0.0  ;;  %v3455_v33 = vmul.f32 0.2, %v3423_v26  ;;  %v3079_v4 = vpop.f32.mrf.mxu0  ;;  %v3463_v56 = vmul.f32 0.2, %v3431_v8  ;;  %v3424_v1 = vadd.f32 %v3402_v15, %v3367_v31 }
 0x4fe   :  { %v3432_v2 = vadd.f32 %v3402_v15, %v3375_v30  ;;  %v3120_v6 = vpop.f32.mrf.mxu1  ;;  %v3080_v39 = vadd.f32 %v3079_v4, %v1490_v23  ;;  %vm3447_vm9 = vcmp.ge.f32.partialorder %v3431_v8, 0.0  ;;  %v3119_v42 = vadd.f32 %v3118_v32, %v3076_v36 }
 0x4ff   :  { %v3081_v40 = vpop.f32.mrf.mxu0  ;;  %vm3440_vm10 = vcmp.ge.f32.partialorder %v3424_v1, 0.0  ;;  %v3456_v37 = vmul.f32 0.2, %v3424_v1  ;;  %v3471_v12 = vsel %vm3439_vm8, %v3423_v26, %v3455_v33  ;;  %v3479_v7 = vsel %vm3447_vm9, %v3431_v8, %v3463_v56 }
 0x500   :  { %vm3448_vm11 = vcmp.ge.f32.partialorder %v3432_v2, 0.0  ;;  %v3464_v41 = vmul.f32 0.2, %v3432_v2  ;;  %v3122_v10 = vpop.f32.mrf.mxu1  ;;  %v3082_v5 = vadd.f32 %v3081_v40, %v1494_v34  ;;  %v3121_v45 = vadd.f32 %v3120_v6, %v3078_v38 }
 0x501   :  { %v3123_v3 = vadd.f32 %v3122_v10, %v3080_v39  ;;  %v3472_v43 = vsel %vm3440_vm10, %v3424_v1, %v3456_v37  ;;  %v3349_v6 = vrot.slane %v4670_v22, %v4710_v62  ;;  %v3353_v10 = vrot.slane %v4670_v22, %v4713_v11 }
 0x502   :  { %v3480_v44 = vsel %vm3448_vm11, %v3432_v2, %v3464_v41  ;;  %v3124_v46 = vpop.f32.mrf.mxu1  ;;  %v3913_v47 = vpack.c.bf16 %v3472_v43, %v3471_v12  ;;  %v3406_v41 = vrot.slane %v4675_v58, %v4710_v62  ;;  %v3410_v43 = vrot.slane %v4675_v58, %v4713_v11 }
 0x503   :  { %v3917_v48 = vpack.c.bf16 %v3480_v44, %v3479_v7  ;;  %v3171_v49 = vadd.f32 %v3123_v3, %v3119_v42  ;;  %v3125_v9 = vadd.f32 %v3124_v46, %v3082_v5 }
 0x504   :  { %3533 = vst [vmem:[#allocation22 + $0x10] sm:$0xff] %v3913_v47 }
 0x505   :  { %3537 = vst [vmem:[#allocation22 + $0x30] sm:$0xff] %v3917_v48  ;;  %v3172_v50 = vrot.slane %v3171_v49, 4  ;;  %v3178_v51 = vadd.f32 %v3125_v9, %v3121_v45 }
 0x507   :  { %v3173_v52 = vadd.f32 %v3172_v50, %v3171_v49  ;;  %v3179_v53 = vrot.slane %v3178_v51, 4 }
 0x509   :  { %v3174_v54 = vrot.slane %v3173_v52, 2  ;;  %v3180_v19 = vadd.f32 %v3179_v53, %v3178_v51 }
 0x50b   :  { %v3175_v55 = vadd.f32 %v3174_v54, %v3173_v52  ;;  %v3181_v20 = vrot.slane %v3180_v19, 2 }
 0x50d   :  { %v3176_v57 = vrot.slane %v3175_v55, 1  ;;  %v3182_v21 = vadd.f32 %v3181_v20, %v3180_v19 }
 0x50f   :  { %v3177_v59 = vadd.f32 %v3176_v57, %v3175_v55  ;;  %v3183_v60 = vrot.slane %v3182_v21, 1 }
 0x511   :  { %v3191_v61 = vmul.f32 0.0625, %v3177_v59  ;;  %v3184_v63 = vadd.f32 %v3183_v60, %v3182_v21 }
 0x513   :  { %v3199_v13 = vsub.f32 %v3119_v42, %v3191_v61  ;;  %v3207_v14 = vsub.f32 %v3123_v3, %v3191_v61  ;;  %v3192_v17 = vmul.f32 0.0625, %v3184_v63 }
 0x515   :  { %v3215_v0 = vmul.f32 %v3199_v13, %v3199_v13  ;;  %v3223_v16 = vmul.f32 %v3207_v14, %v3207_v14  ;;  %v3200_v18 = vsub.f32 %v3121_v45, %v3192_v17  ;;  %v3208_v23 = vsub.f32 %v3125_v9, %v3192_v17 }
 0x517   :  { %v3267_v34 = vadd.f32 %v3223_v16, %v3215_v0  ;;  %v3216_v24 = vmul.f32 %v3200_v18, %v3200_v18  ;;  %v3224_v25 = vmul.f32 %v3208_v23, %v3208_v23 }
 0x519   :  { %v3268_v28 = vrot.slane %v3267_v34, 4  ;;  %v3274_v29 = vadd.f32 %v3224_v25, %v3216_v24 }
 0x51b   :  { %v3269_v35 = vadd.f32 %v3268_v28, %v3267_v34  ;;  %v3275_v15 = vrot.slane %v3274_v29, 4 }
 0x51d   :  { %v3270_v26 = vrot.slane %v3269_v35, 2  ;;  %v3276_v8 = vadd.f32 %v3275_v15, %v3274_v29 }
 0x51f   :  { %v3271_v31 = vadd.f32 %v3270_v26, %v3269_v35  ;;  %v3277_v30 = vrot.slane %v3276_v8, 2 }
 0x521   :  { %v3272_v27 = vrot.slane %v3271_v31, 1  ;;  %v3278_v32 = vadd.f32 %v3277_v30, %v3276_v8 }
 0x523   :  { %v3273_v33 = vadd.f32 %v3272_v27, %v3271_v31  ;;  %v3279_v36 = vrot.slane %v3278_v32, 1 }
 0x525   :  { %v3287_v38 = vmul.f32 0.0625, %v3273_v33  ;;  %v3280_v4 = vadd.f32 %v3279_v36, %v3278_v32 }
 0x527   :  { %v3295_v56 = vadd.f32 0.8, %v3287_v38  ;;  %v3288_v1 = vmul.f32 0.0625, %v3280_v4 }
 0x529   :  { %4101 = vrsqrt.f32 %v3295_v56  ;;  %v3296_v2 = vadd.f32 0.8, %v3288_v1 }
 0x52b   :  { %4103 = vrsqrt.f32 %v3296_v2 }
 0x536   :  { %v4102_v39 = vpop.eup %4101 }
 0x537   :  { %v3311_v40 = vmul.f32 %v4102_v39, %v3199_v13  ;;  %v3319_v37 = vmul.f32 %v4102_v39, %v3207_v14 }
 0x538   :  { %v4104_v12 = vpop.eup %4103 }
 0x539   :  { %v3368_v42 = vmul.f32 %v3349_v6, %v3311_v40  ;;  %v3376_v3 = vmul.f32 %v3349_v6, %v3319_v37  ;;  %v3312_v5 = vmul.f32 %v4104_v12, %v3200_v18  ;;  %v3320_v7 = vmul.f32 %v4104_v12, %v3208_v23 }
 0x53b   :  { %v3425_v44 = vadd.f32 %v3406_v41, %v3368_v42  ;;  %v3433_v45 = vadd.f32 %v3406_v41, %v3376_v3  ;;  %v3369_v46 = vmul.f32 %v3353_v10, %v3312_v5  ;;  %v3377_v47 = vmul.f32 %v3353_v10, %v3320_v7 }
 0x53d   :  { %v3457_v48 = vmul.f32 0.2, %v3425_v44  ;;  %v3465_v49 = vmul.f32 0.2, %v3433_v45  ;;  %v3426_v9 = vadd.f32 %v3410_v43, %v3369_v46  ;;  %v3434_v50 = vadd.f32 %v3410_v43, %v3377_v47 }
 0x53e   :  { %vm3441_vm12 = vcmp.ge.f32.partialorder %v3425_v44, 0.0  ;;  %vm3449_vm13 = vcmp.ge.f32.partialorder %v3433_v45, 0.0 }
 0x53f   :  { %vm3442_vm14 = vcmp.ge.f32.partialorder %v3426_v9, 0.0  ;;  %vm3450_vm15 = vcmp.ge.f32.partialorder %v3434_v50, 0.0  ;;  %v3458_v22 = vmul.f32 0.2, %v3426_v9  ;;  %v3466_v62 = vmul.f32 0.2, %v3434_v50 }
 0x540   :  { %v3473_v51 = vsel %vm3441_vm12, %v3425_v44, %v3457_v48  ;;  %v3481_v52 = vsel %vm3449_vm13, %v3433_v45, %v3465_v49 }
 0x541   :  { %v3474_v53 = vsel %vm3442_vm14, %v3426_v9, %v3458_v22  ;;  %v3482_v58 = vsel %vm3450_vm15, %v3434_v50, %v3466_v62 }
 0x542   :  { %v3914_v11 = vpack.c.bf16 %v3474_v53, %v3473_v51  ;;  %v3918_v54 = vpack.c.bf16 %v3482_v58, %v3481_v52 }
 0x544   :  { %3534 = vst [vmem:[#allocation22 + $0x18] sm:$0xff] %v3914_v11  ;;  %3538 = vst [vmem:[#allocation22 + $0x38] sm:$0xff] %v3918_v54 }
 0x545   :  { %4356 = shalt.err (!%p4353_p8)
}
 0x546   :  { %3550 = dma.vmem_to_hbm [thread:$0]  %s3545_s14, 1024, %s4757_s15, [#allocation4], %s4399_s8, %s4399_s8, %s4400_s21  }
 0x547   :  { %4379 = dma.done.wait [#allocation4], 1024  }
 0x548   :  { %4380 = vsyncadd [#allocation4], 4294966272 }
 0x549   :  { %3554 = vsyncpa [#allocation3], 1 }
 0x54a   :  { %3555 = vsyncpa [#allocation6], 1 }
 0x54b   :  { %3556 = vsyncpa [#allocation9], 1 }
 0x54c   :  { %3557 = vsyncpa [#allocation12], 1 }
 0x54d   :  { %3558 = vsyncpa [#allocation15], 1 }
 0x54e   :  { %3559 = vsyncpa [#allocation18], 1 }
 0x54f   :  { %3560 = vsyncpa [#allocation21], 1 }
 0x550   :  { %3561 = vsyncpa [#allocation4], 1 }

</bundles_post_ra>
